<compile_context>
chip_gen: v7x
topology: tpu7x:2x2x1
jax: 0.10.0
libtpu: 0.0.40
codegen_flags: <defaults>
</compile_context>

<pallas_src>
import functools

import jax
import jax.numpy as jnp
import numpy as np
from jax import lax
from jax.experimental import pallas as pl
from jax.experimental.pallas import tpu as pltpu


# ----------------------------------------------------------------------------
# Coordinate maps (AddCoords, with_r=False).  Reproduces the reference quirk:
# the column index j is normalized by (H-1) and the row index i by (W-1).
# ----------------------------------------------------------------------------
def _coord_maps(H, W):
    j = jnp.arange(W, dtype=jnp.float32)
    i = jnp.arange(H, dtype=jnp.float32)
    xx = (jnp.broadcast_to(j[None, :], (H, W)) / (H - 1)) * 2.0 - 1.0
    yy = (jnp.broadcast_to(i[:, None], (H, W)) / (W - 1)) * 2.0 - 1.0
    return xx, yy


def _pick_row_tile(H, target_rows):
    """Largest divisor of H that is <= target_rows (>=1)."""
    th = max(1, min(H, target_rows))
    while H % th:
        th -= 1
    return th


# ----------------------------------------------------------------------------
# Kernel 1: ConvTranspose2d with kernel=2, stride=2 (applied to AddCoords(x)).
# stride == kernel -> no overlap: each input pixel produces one 2x2 patch.
# The coordinate channels + bias contribute a data-independent per-pixel map
# (cb_ref) that is precomputed in the wrapper and simply added here.
# Output layout (1, H, 2, W, 2*Cout): kh is an explicit axis, so the wrapper's
# reshape to (B, 2H, 2W, Cout) is a free contiguous reshape (no HBM transpose).
# ----------------------------------------------------------------------------
def _convt2x2_kernel(x_ref, w_ref, cb_ref, o_ref):
    # x_ref : (1, H, W, Cin)
    # w_ref : (2, Cin, 2*Cout)        columns = kw*Cout + oc, leading dim = kh
    # cb_ref: (2, H*W, 2*Cout)  f32   coord-channel + bias contribution
    # o_ref : (1, H, 2, W, 2*Cout)
    _, H, W, Cin = x_ref.shape
    n2c = o_ref.shape[4]
    # Widen before the reshape (proven f32 relayout path), narrow again for MXU.
    x2d = x_ref[...].astype(jnp.float32).reshape(H * W, Cin).astype(w_ref.dtype)
    for kh in range(2):
        y = jnp.dot(x2d, w_ref[kh], preferred_element_type=jnp.float32)
        y = y + cb_ref[kh]
        o_ref[0, :, kh, :, :] = y.reshape(H, W, n2c).astype(o_ref.dtype)


def conv_transpose_2x2(x_nhwc, w_pt, b_pt, *, out_dtype=jnp.float32):
    """AddCoords + ConvTranspose2d(k=2, s=2).

    x_nhwc: (B, H, W, Cin)   -- WITHOUT coordinate channels (handled here).
    w_pt  : PyTorch layout (Cin + 2, Cout, 2, 2);  b_pt: (Cout,).
    Returns (B, 2H, 2W, Cout).
    """
    B, H, W, Cin = x_nhwc.shape
    Cout = w_pt.shape[1]
    w_pt = w_pt.astype(jnp.float32)

    # Main weight per output-row parity kh: (2, Cin, 2*Cout), col = kw*Cout + oc.
    wm = jnp.transpose(w_pt[:Cin], (2, 0, 3, 1)).reshape(2, Cin, 2 * Cout)
    wm = wm.astype(x_nhwc.dtype)

    # Coord-channel + bias contribution: data independent -> precomputed f32 map.
    xx, yy = _coord_maps(H, W)
    coords = jnp.stack([xx.reshape(-1), yy.reshape(-1)], axis=-1)          # (H*W, 2)
    wc = jnp.transpose(w_pt[Cin:Cin + 2], (2, 0, 3, 1)).reshape(2, 2, 2 * Cout)
    cb = jnp.einsum("pc,kcm->kpm", coords, wc)
    cb = cb + jnp.tile(b_pt.astype(jnp.float32), 2)[None, None, :]         # (2, H*W, 2*Cout)

    out5 = pl.pallas_call(
        _convt2x2_kernel,
        out_shape=jax.ShapeDtypeStruct((B, H, 2, W, 2 * Cout), out_dtype),
        grid=(B,),
        in_specs=[
            pl.BlockSpec((1, H, W, Cin), lambda b: (b, 0, 0, 0)),
            pl.BlockSpec((2, Cin, 2 * Cout), lambda b: (0, 0, 0)),
            pl.BlockSpec((2, H * W, 2 * Cout), lambda b: (0, 0, 0)),
        ],
        out_specs=pl.BlockSpec((1, H, 2, W, 2 * Cout), lambda b: (b, 0, 0, 0, 0)),
        compiler_params=pltpu.CompilerParams(
            dimension_semantics=("parallel",),
            vmem_limit_bytes=48 * 1024 * 1024),
    )(x_nhwc, wm, cb)

    # (b, i, kh, j, kw*Cout+oc) row-major == (b, 2i+kh, 2j+kw, oc): free reshape.
    return out5.reshape(B, 2 * H, 2 * W, Cout)


# ----------------------------------------------------------------------------
# Kernel 2: AddCoords + Conv2d 3x3 (pad=1, bias=False) + BatchNorm(eval) + ReLU.
# Grid = (B, H/TH) row tiles.  The full padded image for one batch element is
# the input block (DMA'd once per b, resident across its row tiles); the kernel
# slices the TH+2 halo rows it needs, builds one im2col patch (TH*W, 9*Cin) and
# does a single MXU matmul.  Coord-channel contribution + BN shift are folded
# into a precomputed per-pixel bias map.
# ----------------------------------------------------------------------------
def _conv3x3_bn_relu_kernel(x_ref, w_ref, scale_ref, bias_ref, o_ref):
    # x_ref    : (1, H+2, W+2, Cin)   full zero-padded image for this batch elem
    # w_ref    : (9*Cin, Cout)        row = (dy*3+dx)*Cin + ci
    # scale_ref: (1, Cout)      f32   folded BN scale
    # bias_ref : (TH, W, Cout)  f32   coord contribution * scale + BN shift
    # o_ref    : (1, TH, W, Cout)
    _, TH, W, Cout = o_ref.shape
    Cin = x_ref.shape[3]
    row0 = pl.multiple_of(pl.program_id(1) * TH, TH)

    # (TH+2, W+2, Cin) slab: this row tile plus its 1-pixel halo (f32 for cheap
    # slicing / relayout; narrowed again right before the MXU matmul).
    xin = x_ref[0, pl.ds(row0, TH + 2), :, :].astype(jnp.float32)

    patches = []
    for dy in range(3):
        for dx in range(3):
            patches.append(xin[dy:dy + TH, dx:dx + W, :].reshape(TH * W, Cin))
    p = jnp.concatenate(patches, axis=-1).astype(w_ref.dtype)     # (TH*W, 9*Cin)

    acc = jnp.dot(p, w_ref[...], preferred_element_type=jnp.float32)
    y = acc * scale_ref[...] + bias_ref[...].reshape(TH * W, Cout)
    o_ref[...] = jnp.maximum(y, 0.0).reshape(1, TH, W, Cout).astype(o_ref.dtype)


def coordconv3x3_bn_relu(x_nhwc, w_pt, gamma, beta, rmean, rvar, *,
                         eps=1e-5, out_dtype=jnp.float32, row_tile_target=128):
    """CoordConv2d(3x3, pad=1, bias=False) + BatchNorm2d(eval) + ReLU.

    x_nhwc: (B, H, W, Cin)  -- WITHOUT coordinate channels (handled here).
    w_pt  : PyTorch layout (Cout, Cin + 2, 3, 3).
    """
    B, H, W, Cin = x_nhwc.shape
    Cout = w_pt.shape[0]
    w_pt = w_pt.astype(jnp.float32)

    # im2col weight for the data channels: (9*Cin, Cout).
    w_mat = jnp.transpose(w_pt[:, :Cin], (2, 3, 1, 0)).reshape(9 * Cin, Cout)
    w_mat = w_mat.astype(x_nhwc.dtype)

    # Folded BatchNorm (eval mode).
    inv_std = 1.0 / jnp.sqrt(rvar.astype(jnp.float32) + eps)
    scale = (gamma.astype(jnp.float32) * inv_std).reshape(1, Cout)
    shift = beta.astype(jnp.float32) - rmean.astype(jnp.float32) * scale[0]

    # Coordinate-channel contribution (data independent), zero-padded exactly
    # like the reference (coords are appended BEFORE the conv's zero padding),
    # then folded together with the BN shift into one per-pixel bias map.
    xx, yy = _coord_maps(H, W)
    cpad = jnp.pad(jnp.stack([xx, yy], axis=-1), ((1, 1), (1, 1), (0, 0)))
    wc = w_pt[:, Cin:Cin + 2]                                    # (Cout, 2, 3, 3)
    cmap = jnp.zeros((H, W, Cout), jnp.float32)
    for dy in range(3):
        for dx in range(3):
            cmap = cmap + jnp.einsum("hwc,oc->hwo",
                                     cpad[dy:dy + H, dx:dx + W], wc[:, :, dy, dx])
    bias_map = cmap * scale[0][None, None, :] + shift[None, None, :]

    # 1-pixel halo materialized once.
    # TODO(synk): fold this pad (and the skip-connection concat) into the kernel
    # via halo-aware row tiles to save the extra HBM pass at large resolutions.
    x_pad = jnp.pad(x_nhwc, ((0, 0), (1, 1), (1, 1), (0, 0)))

    TH = _pick_row_tile(H, max(1, row_tile_target // max(W, 1)))
    nR = H // TH

    return pl.pallas_call(
        _conv3x3_bn_relu_kernel,
        out_shape=jax.ShapeDtypeStruct((B, H, W, Cout), out_dtype),
        grid=(B, nR),
        in_specs=[
            pl.BlockSpec((1, H + 2, W + 2, Cin), lambda b, r: (b, 0, 0, 0)),
            pl.BlockSpec((9 * Cin, Cout), lambda b, r: (0, 0)),
            pl.BlockSpec((1, Cout), lambda b, r: (0, 0)),
            pl.BlockSpec((TH, W, Cout), lambda b, r: (r, 0, 0)),
        ],
        out_specs=pl.BlockSpec((1, TH, W, Cout), lambda b, r: (b, r, 0, 0)),
        compiler_params=pltpu.CompilerParams(
            dimension_semantics=("parallel", "parallel"),
            vmem_limit_bytes=48 * 1024 * 1024),
    )(x_pad, w_mat, scale, bias_map)


# ----------------------------------------------------------------------------
# Full UpConv forward (NCHW in / NCHW out, matching PyTorch).
# compute_dtype=jnp.bfloat16 stores activations/weights in bf16 (half the HBM
# traffic, bf16 MXU) with f32 accumulation and an f32 BN+ReLU epilogue.
# ----------------------------------------------------------------------------
def upconv_forward(params, x1_nchw, x2_nchw, *, compute_dtype=jnp.float32):
    x1 = jnp.transpose(x1_nchw, (0, 2, 3, 1)).astype(compute_dtype)
    x2 = jnp.transpose(x2_nchw, (0, 2, 3, 1)).astype(compute_dtype)

    # self.up = CoordConvTranspose2d(in_ch//2 + 2 -> in_ch//2, k=2, s=2)
    x1u = conv_transpose_2x2(x1, params["up_w"], params["up_b"],
                             out_dtype=compute_dtype)

    # F.pad(x1, (pad_y_l, pad_y_r, pad_x_l, pad_x_r)); torch.cat([x2, x1], dim=1)
    diff_x = x2.shape[1] - x1u.shape[1]   # H diff
    diff_y = x2.shape[2] - x1u.shape[2]   # W diff
    px_l, py_l = diff_x // 2, diff_y // 2
    x1u = jnp.pad(x1u, ((0, 0), (px_l, diff_x - px_l),
                        (py_l, diff_y - py_l), (0, 0)))
    x = jnp.concatenate([x2, x1u], axis=-1)
    # TODO(synk): fuse this pad+concat into the first conv kernel (two input refs
    # with the weight split along Cin) to remove the remaining XLA glue passes.

    # DoubleConv
    h = coordconv3x3_bn_relu(x, params["c1_w"], params["bn1_g"], params["bn1_b"],
                             params["bn1_m"], params["bn1_v"],
                             out_dtype=compute_dtype)
    h = coordconv3x3_bn_relu(h, params["c2_w"], params["bn2_g"], params["bn2_b"],
                             params["bn2_m"], params["bn2_v"],
                             out_dtype=jnp.float32)
    return jnp.transpose(h, (0, 3, 1, 2))


# ----------------------------------------------------------------------------
# Pure-JAX (lax.conv) reference used only for a numerical sanity check.
# ----------------------------------------------------------------------------
def _ref_add_coords_nchw(x):
    B, C, H, W = x.shape
    j = jnp.arange(W, dtype=jnp.float32)
    i = jnp.arange(H, dtype=jnp.float32)
    xx = (jnp.broadcast_to(j[None, :], (H, W)) / (H - 1)) * 2.0 - 1.0
    yy = (jnp.broadcast_to(i[:, None], (H, W)) / (W - 1)) * 2.0 - 1.0
    xx = jnp.broadcast_to(xx[None, None], (B, 1, H, W))
    yy = jnp.broadcast_to(yy[None, None], (B, 1, H, W))
    return jnp.concatenate([x, xx, yy], axis=1)


def ref_forward(params, x1, x2):
    def conv_t(x, w, b):  # PyTorch ConvTranspose2d, k=2, s=2, p=0
        w_flip = jnp.transpose(w[:, :, ::-1, ::-1], (1, 0, 2, 3))  # OIHW
        y = lax.conv_general_dilated(
            x, w_flip, window_strides=(1, 1), padding=((1, 1), (1, 1)),
            lhs_dilation=(2, 2), dimension_numbers=("NCHW", "OIHW", "NCHW"))
        return y + b[None, :, None, None]

    def conv3(x, w):
        return lax.conv_general_dilated(
            x, w, (1, 1), ((1, 1), (1, 1)),
            dimension_numbers=("NCHW", "OIHW", "NCHW"))

    def bn_relu(x, g, b, m, v, eps=1e-5):
        s = g / jnp.sqrt(v + eps)
        return jnp.maximum(x * s[None, :, None, None]
                           + (b - m * s)[None, :, None, None], 0.0)

    x1u = conv_t(_ref_add_coords_nchw(x1), params["up_w"], params["up_b"])
    diff_x = x2.shape[2] - x1u.shape[2]
    diff_y = x2.shape[3] - x1u.shape[3]
    px_l, py_l = diff_x // 2, diff_y // 2
    x1u = jnp.pad(x1u, ((0, 0), (0, 0), (px_l, diff_x - px_l),
                        (py_l, diff_y - py_l)))
    x = jnp.concatenate([x2, x1u], axis=1)
    h = bn_relu(conv3(_ref_add_coords_nchw(x), params["c1_w"]),
                params["bn1_g"], params["bn1_b"], params["bn1_m"], params["bn1_v"])
    h = bn_relu(conv3(_ref_add_coords_nchw(h), params["c2_w"]),
                params["bn2_g"], params["bn2_b"], params["bn2_m"], params["bn2_v"])
    return h


# ----------------------------------------------------------------------------
if __name__ == "__main__":
    B, in_ch, out_ch = 2, 8, 8
    H1 = W1 = 8            # x1 spatial (gets upsampled x2)
    H2 = W2 = 16           # x2 spatial

    key = jax.random.PRNGKey(0)
    ks = jax.random.split(key, 16)
    f32 = jnp.float32

    x1 = jax.random.normal(ks[0], (B, in_ch // 2, H1, W1), f32)
    x2 = jax.random.normal(ks[1], (B, in_ch // 2, H2, W2), f32)

    params = {
        # ConvTranspose2d(in_ch//2 + 2 -> in_ch//2, k=2, s=2): w (Cin, Cout, 2, 2)
        "up_w": 0.1 * jax.random.normal(ks[2], (in_ch // 2 + 2, in_ch // 2, 2, 2), f32),
        "up_b": 0.1 * jax.random.normal(ks[3], (in_ch // 2,), f32),
        # Conv2d(in_ch + 2 -> out_ch, 3x3, bias=False): w (Cout, Cin, 3, 3)
        "c1_w": 0.1 * jax.random.normal(ks[4], (out_ch, in_ch + 2, 3, 3), f32),
        "bn1_g": 1.0 + 0.1 * jax.random.normal(ks[5], (out_ch,), f32),
        "bn1_b": 0.1 * jax.random.normal(ks[6], (out_ch,), f32),
        "bn1_m": 0.1 * jax.random.normal(ks[7], (out_ch,), f32),
        "bn1_v": 1.0 + 0.1 * jnp.abs(jax.random.normal(ks[8], (out_ch,), f32)),
        # Conv2d(out_ch + 2 -> out_ch, 3x3, bias=False)
        "c2_w": 0.1 * jax.random.normal(ks[9], (out_ch, out_ch + 2, 3, 3), f32),
        "bn2_g": 1.0 + 0.1 * jax.random.normal(ks[10], (out_ch,), f32),
        "bn2_b": 0.1 * jax.random.normal(ks[11], (out_ch,), f32),
        "bn2_m": 0.1 * jax.random.normal(ks[12], (out_ch,), f32),
        "bn2_v": 1.0 + 0.1 * jnp.abs(jax.random.normal(ks[13], (out_ch,), f32)),
    }

    ref = jax.block_until_ready(ref_forward(params, x1, x2))

    # f32 path: tight tolerance (accumulation-order differences only).
    fwd_f32 = jax.jit(functools.partial(upconv_forward, compute_dtype=jnp.float32))
    out = jax.block_until_ready(fwd_f32(params, x1, x2))
    assert out.shape == (B, out_ch, H2, W2), out.shape
    np.testing.assert_allclose(np.asarray(out), np.asarray(ref),
                               rtol=1e-4, atol=1e-4)

    # bf16 activations/weights with f32 accumulation (bandwidth path, v5e/v6e/v7x).
    fwd_bf16 = jax.jit(functools.partial(upconv_forward, compute_dtype=jnp.bfloat16))
    out_bf16 = jax.block_until_ready(fwd_bf16(params, x1, x2))
    np.testing.assert_allclose(np.asarray(out_bf16), np.asarray(ref),
                               rtol=5e-2, atol=5e-2)

    print("KERNEL_OK")
</pallas_src>

<mosaic_0001>
module attributes {stable_mosaic.version = 11 : i64} {
  func.func @_convt2x2_kernel(%arg0: i32, %arg1: memref<1x8x8x4xf32, #tpu.memory_space<vmem>>, %arg2: memref<2x4x8xf32, #tpu.memory_space<vmem>>, %arg3: memref<2x64x8xf32, #tpu.memory_space<vmem>>, %arg4: memref<1x8x2x8x8xf32, #tpu.memory_space<vmem>>) attributes {dimension_semantics = [#tpu.dimension_semantics<parallel>], iteration_bounds = array<i64: 2>, scalar_prefetch = 0 : i64, scratch_operands = 0 : i64, tpu.core_type = #tpu.core_type<tc>, window_params = [{transform_indices = @transform_0, window_bounds = array<i64: 1, 8, 8, 4>}, {pipeline_mode = #tpu.pipeline_mode<synchronous>, transform_indices = @transform_1, window_bounds = array<i64: 2, 4, 8>}, {pipeline_mode = #tpu.pipeline_mode<synchronous>, transform_indices = @transform_2, window_bounds = array<i64: 2, 64, 8>}, {transform_indices = @transform_3, window_bounds = array<i64: 1, 8, 2, 8, 8>}]} {
    %c0 = arith.constant 0 : index
    %c0_0 = arith.constant 0 : index
    %c0_1 = arith.constant 0 : index
    %c0_2 = arith.constant 0 : index
    %0 = vector.load %arg1[%c0, %c0_0, %c0_1, %c0_2] : memref<1x8x8x4xf32, #tpu.memory_space<vmem>>, vector<1x8x8x4xf32>
    %1 = vector.shape_cast %0 : vector<1x8x8x4xf32> to vector<64x4xf32>
    %c0_3 = arith.constant 0 : index
    %c0_4 = arith.constant 0 : index
    %c0_5 = arith.constant 0 : index
    %2 = vector.load %arg2[%c0_3, %c0_4, %c0_5] : memref<2x4x8xf32, #tpu.memory_space<vmem>>, vector<1x4x8xf32>
    %3 = vector.shape_cast %2 : vector<1x4x8xf32> to vector<4x8xf32>
    %cst = arith.constant dense<0.000000e+00> : vector<64x8xf32>
    %4 = tpu.matmul %1, %3, %cst {dimension_numbers = #tpu.dot_dimension_numbers<[1], [0], [0], [1], [0, 0, 1, 1], [], []>} : vector<64x4xf32>, vector<4x8xf32>, vector<64x8xf32> -> vector<64x8xf32>
    %c0_6 = arith.constant 0 : index
    %c0_7 = arith.constant 0 : index
    %c0_8 = arith.constant 0 : index
    %5 = vector.load %arg3[%c0_6, %c0_7, %c0_8] : memref<2x64x8xf32, #tpu.memory_space<vmem>>, vector<1x64x8xf32>
    %6 = vector.shape_cast %5 : vector<1x64x8xf32> to vector<64x8xf32>
    %7 = arith.addf %4, %6 : vector<64x8xf32>
    %8 = vector.shape_cast %7 : vector<64x8xf32> to vector<8x8x8xf32>
    %c0_9 = arith.constant 0 : index
    %c0_10 = arith.constant 0 : index
    %c0_11 = arith.constant 0 : index
    %c0_12 = arith.constant 0 : index
    %c0_13 = arith.constant 0 : index
    %9 = vector.load %arg4[%c0_9, %c0_10, %c0_11, %c0_12, %c0_13] : memref<1x8x2x8x8xf32, #tpu.memory_space<vmem>>, vector<1x8x1x8x8xf32>
    %10 = vector.shape_cast %9 : vector<1x8x1x8x8xf32> to vector<8x8x8xf32>
    %11 = vector.shape_cast %8 : vector<8x8x8xf32> to vector<1x8x1x8x8xf32>
    tpu.vector_store %arg4[%c0_9, %c0_10, %c0_11, %c0_12, %c0_13], %11 {strides = array<i32>} : memref<1x8x2x8x8xf32, #tpu.memory_space<vmem>>, vector<1x8x1x8x8xf32>,
    %c1 = arith.constant 1 : index
    %c0_14 = arith.constant 0 : index
    %c0_15 = arith.constant 0 : index
    %12 = vector.load %arg2[%c1, %c0_14, %c0_15] : memref<2x4x8xf32, #tpu.memory_space<vmem>>, vector<1x4x8xf32>
    %13 = vector.shape_cast %12 : vector<1x4x8xf32> to vector<4x8xf32>
    %cst_16 = arith.constant dense<0.000000e+00> : vector<64x8xf32>
    %14 = tpu.matmul %1, %13, %cst_16 {dimension_numbers = #tpu.dot_dimension_numbers<[1], [0], [0], [1], [0, 0, 1, 1], [], []>} : vector<64x4xf32>, vector<4x8xf32>, vector<64x8xf32> -> vector<64x8xf32>
    %c1_17 = arith.constant 1 : index
    %c0_18 = arith.constant 0 : index
    %c0_19 = arith.constant 0 : index
    %15 = vector.load %arg3[%c1_17, %c0_18, %c0_19] : memref<2x64x8xf32, #tpu.memory_space<vmem>>, vector<1x64x8xf32>
    %16 = vector.shape_cast %15 : vector<1x64x8xf32> to vector<64x8xf32>
    %17 = arith.addf %14, %16 : vector<64x8xf32>
    %18 = vector.shape_cast %17 : vector<64x8xf32> to vector<8x8x8xf32>
    %c0_20 = arith.constant 0 : index
    %c0_21 = arith.constant 0 : index
    %c1_22 = arith.constant 1 : index
    %c0_23 = arith.constant 0 : index
    %c0_24 = arith.constant 0 : index
    %19 = vector.load %arg4[%c0_20, %c0_21, %c1_22, %c0_23, %c0_24] : memref<1x8x2x8x8xf32, #tpu.memory_space<vmem>>, vector<1x8x1x8x8xf32>
    %20 = vector.shape_cast %19 : vector<1x8x1x8x8xf32> to vector<8x8x8xf32>
    %21 = vector.shape_cast %18 : vector<8x8x8xf32> to vector<1x8x1x8x8xf32>
    tpu.vector_store %arg4[%c0_20, %c0_21, %c1_22, %c0_23, %c0_24], %21 {strides = array<i32>} : memref<1x8x2x8x8xf32, #tpu.memory_space<vmem>>, vector<1x8x1x8x8xf32>,
    return
  }
  func.func @transform_0(%arg0: i32) -> (i32, i32, i32, i32) {
    %c0_i32 = arith.constant 0 : i32
    %c0_i32_0 = arith.constant 0 : i32
    %c0_i32_1 = arith.constant 0 : i32
    %c0_i32_2 = arith.constant 0 : i32
    return %arg0, %c0_i32, %c0_i32_0, %c0_i32_1 : i32, i32, i32, i32
  }
  func.func @transform_1(%arg0: i32) -> (i32, i32, i32) {
    %c0_i32 = arith.constant 0 : i32
    %c0_i32_0 = arith.constant 0 : i32
    %c0_i32_1 = arith.constant 0 : i32
    %c0_i32_2 = arith.constant 0 : i32
    return %c0_i32, %c0_i32_0, %c0_i32_1 : i32, i32, i32
  }
  func.func @transform_2(%arg0: i32) -> (i32, i32, i32) {
    %c0_i32 = arith.constant 0 : i32
    %c0_i32_0 = arith.constant 0 : i32
    %c0_i32_1 = arith.constant 0 : i32
    %c0_i32_2 = arith.constant 0 : i32
    return %c0_i32, %c0_i32_0, %c0_i32_1 : i32, i32, i32
  }
  func.func @transform_3(%arg0: i32) -> (i32, i32, i32, i32, i32) {
    %c0_i32 = arith.constant 0 : i32
    %c0_i32_0 = arith.constant 0 : i32
    %c0_i32_1 = arith.constant 0 : i32
    %c0_i32_2 = arith.constant 0 : i32
    %c0_i32_3 = arith.constant 0 : i32
    return %arg0, %c0_i32, %c0_i32_0, %c0_i32_1, %c0_i32_2 : i32, i32, i32, i32, i32
  }
}

module attributes {stable_mosaic.version = 11 : i64} {
  func.func @_conv3x3_bn_relu_kernel(%arg0: i32, %arg1: i32, %arg2: memref<1x18x18x8xf32, #tpu.memory_space<vmem>>, %arg3: memref<72x8xf32, #tpu.memory_space<vmem>>, %arg4: memref<1x8xf32, #tpu.memory_space<vmem>>, %arg5: memref<8x16x8xf32, #tpu.memory_space<vmem>>, %arg6: memref<1x8x16x8xf32, #tpu.memory_space<vmem>>) attributes {dimension_semantics = [#tpu.dimension_semantics<parallel>, #tpu.dimension_semantics<parallel>], iteration_bounds = array<i64: 2, 2>, scalar_prefetch = 0 : i64, scratch_operands = 0 : i64, tpu.core_type = #tpu.core_type<tc>, window_params = [{transform_indices = @transform_0, window_bounds = array<i64: 1, 18, 18, 8>}, {pipeline_mode = #tpu.pipeline_mode<synchronous>, transform_indices = @transform_1, window_bounds = array<i64: 72, 8>}, {pipeline_mode = #tpu.pipeline_mode<synchronous>, transform_indices = @transform_2, window_bounds = array<i64: 1, 8>}, {transform_indices = @transform_3, window_bounds = array<i64: 8, 16, 8>}, {transform_indices = @transform_4, window_bounds = array<i64: 1, 8, 16, 8>}]} {
    %c8_i32 = arith.constant 8 : i32
    %0 = arith.muli %arg1, %c8_i32 : i32
    %1 = tpu.assume_multiple %0, 8 : i32
    %c0 = arith.constant 0 : index
    %2 = arith.index_cast %1 : i32 to index
    %c0_0 = arith.constant 0 : index
    %c0_1 = arith.constant 0 : index
    %3 = vector.load %arg2[%c0, %2, %c0_0, %c0_1] : memref<1x18x18x8xf32, #tpu.memory_space<vmem>>, vector<1x10x18x8xf32>
    %4 = vector.shape_cast %3 : vector<1x10x18x8xf32> to vector<10x18x8xf32>
    %5 = vector.extract_strided_slice %4 {offsets = [0, 0, 0], sizes = [8, 16, 8], strides = [1, 1, 1]} : vector<10x18x8xf32> to vector<8x16x8xf32>
    %6 = vector.shape_cast %5 : vector<8x16x8xf32> to vector<128x8xf32>
    %7 = vector.extract_strided_slice %4 {offsets = [0, 1, 0], sizes = [8, 16, 8], strides = [1, 1, 1]} : vector<10x18x8xf32> to vector<8x16x8xf32>
    %8 = vector.shape_cast %7 : vector<8x16x8xf32> to vector<128x8xf32>
    %9 = vector.extract_strided_slice %4 {offsets = [0, 2, 0], sizes = [8, 16, 8], strides = [1, 1, 1]} : vector<10x18x8xf32> to vector<8x16x8xf32>
    %10 = vector.shape_cast %9 : vector<8x16x8xf32> to vector<128x8xf32>
    %11 = vector.extract_strided_slice %4 {offsets = [1, 0, 0], sizes = [8, 16, 8], strides = [1, 1, 1]} : vector<10x18x8xf32> to vector<8x16x8xf32>
    %12 = vector.shape_cast %11 : vector<8x16x8xf32> to vector<128x8xf32>
    %13 = vector.extract_strided_slice %4 {offsets = [1, 1, 0], sizes = [8, 16, 8], strides = [1, 1, 1]} : vector<10x18x8xf32> to vector<8x16x8xf32>
    %14 = vector.shape_cast %13 : vector<8x16x8xf32> to vector<128x8xf32>
    %15 = vector.extract_strided_slice %4 {offsets = [1, 2, 0], sizes = [8, 16, 8], strides = [1, 1, 1]} : vector<10x18x8xf32> to vector<8x16x8xf32>
    %16 = vector.shape_cast %15 : vector<8x16x8xf32> to vector<128x8xf32>
    %17 = vector.extract_strided_slice %4 {offsets = [2, 0, 0], sizes = [8, 16, 8], strides = [1, 1, 1]} : vector<10x18x8xf32> to vector<8x16x8xf32>
    %18 = vector.shape_cast %17 : vector<8x16x8xf32> to vector<128x8xf32>
    %19 = vector.extract_strided_slice %4 {offsets = [2, 1, 0], sizes = [8, 16, 8], strides = [1, 1, 1]} : vector<10x18x8xf32> to vector<8x16x8xf32>
    %20 = vector.shape_cast %19 : vector<8x16x8xf32> to vector<128x8xf32>
    %21 = vector.extract_strided_slice %4 {offsets = [2, 2, 0], sizes = [8, 16, 8], strides = [1, 1, 1]} : vector<10x18x8xf32> to vector<8x16x8xf32>
    %22 = vector.shape_cast %21 : vector<8x16x8xf32> to vector<128x8xf32>
    %23 = tpu.concatenate %6, %8, %10, %12, %14, %16, %18, %20, %22 in 1 : vector<128x8xf32>, vector<128x8xf32>, vector<128x8xf32>, vector<128x8xf32>, vector<128x8xf32>, vector<128x8xf32>, vector<128x8xf32>, vector<128x8xf32>, vector<128x8xf32> -> vector<128x72xf32>
    %c0_2 = arith.constant 0 : index
    %c0_3 = arith.constant 0 : index
    %24 = vector.load %arg3[%c0_2, %c0_3] : memref<72x8xf32, #tpu.memory_space<vmem>>, vector<72x8xf32>
    %cst = arith.constant dense<0.000000e+00> : vector<128x8xf32>
    %25 = tpu.matmul %23, %24, %cst {dimension_numbers = #tpu.dot_dimension_numbers<[1], [0], [0], [1], [0, 0, 1, 1], [], []>} : vector<128x72xf32>, vector<72x8xf32>, vector<128x8xf32> -> vector<128x8xf32>
    %c0_4 = arith.constant 0 : index
    %c0_5 = arith.constant 0 : index
    %26 = vector.load %arg4[%c0_4, %c0_5] : memref<1x8xf32, #tpu.memory_space<vmem>>, vector<1x8xf32>
    %27 = vector.broadcast %26 : vector<1x8xf32> to vector<128x8xf32>
    %28 = arith.mulf %25, %27 : vector<128x8xf32>
    %c0_6 = arith.constant 0 : index
    %c0_7 = arith.constant 0 : index
    %c0_8 = arith.constant 0 : index
    %29 = vector.load %arg5[%c0_6, %c0_7, %c0_8] : memref<8x16x8xf32, #tpu.memory_space<vmem>>, vector<8x16x8xf32>
    %30 = vector.shape_cast %29 : vector<8x16x8xf32> to vector<128x8xf32>
    %31 = arith.addf %28, %30 : vector<128x8xf32>
    %cst_9 = arith.constant 0.000000e+00 : f32
    %32 = vector.broadcast %cst_9 : f32 to vector<128x8xf32>
    %33 = arith.maximumf %31, %32 : vector<128x8xf32>
    %34 = vector.shape_cast %33 : vector<128x8xf32> to vector<1x8x16x8xf32>
    %c0_10 = arith.constant 0 : index
    %c0_11 = arith.constant 0 : index
    %c0_12 = arith.constant 0 : index
    %c0_13 = arith.constant 0 : index
    %35 = vector.load %arg6[%c0_10, %c0_11, %c0_12, %c0_13] : memref<1x8x16x8xf32, #tpu.memory_space<vmem>>, vector<1x8x16x8xf32>
    tpu.vector_store %arg6[%c0_10, %c0_11, %c0_12, %c0_13], %34 {strides = array<i32>} : memref<1x8x16x8xf32, #tpu.memory_space<vmem>>, vector<1x8x16x8xf32>,
    return
  }
  func.func @transform_0(%arg0: i32, %arg1: i32) -> (i32, i32, i32, i32) {
    %c0_i32 = arith.constant 0 : i32
    %c0_i32_0 = arith.constant 0 : i32
    %c0_i32_1 = arith.constant 0 : i32
    %c0_i32_2 = arith.constant 0 : i32
    return %arg0, %c0_i32, %c0_i32_0, %c0_i32_1 : i32, i32, i32, i32
  }
  func.func @transform_1(%arg0: i32, %arg1: i32) -> (i32, i32) {
    %c0_i32 = arith.constant 0 : i32
    %c0_i32_0 = arith.constant 0 : i32
    %c0_i32_1 = arith.constant 0 : i32
    return %c0_i32, %c0_i32_0 : i32, i32
  }
  func.func @transform_2(%arg0: i32, %arg1: i32) -> (i32, i32) {
    %c0_i32 = arith.constant 0 : i32
    %c0_i32_0 = arith.constant 0 : i32
    %c0_i32_1 = arith.constant 0 : i32
    return %c0_i32, %c0_i32_0 : i32, i32
  }
  func.func @transform_3(%arg0: i32, %arg1: i32) -> (i32, i32, i32) {
    %c0_i32 = arith.constant 0 : i32
    %c0_i32_0 = arith.constant 0 : i32
    %c0_i32_1 = arith.constant 0 : i32
    return %arg1, %c0_i32, %c0_i32_0 : i32, i32, i32
  }
  func.func @transform_4(%arg0: i32, %arg1: i32) -> (i32, i32, i32, i32) {
    %c0_i32 = arith.constant 0 : i32
    %c0_i32_0 = arith.constant 0 : i32
    %c0_i32_1 = arith.constant 0 : i32
    return %arg0, %arg1, %c0_i32, %c0_i32_0 : i32, i32, i32, i32
  }
}

</mosaic_0001>

<bundles_post_ra>
// kernel: tile.8
= control target key start
LH: loop header
LB: loop body
LE: loop exit
PB: predicated region body
PF: predicated region fallthrough
CT: control target
= control target key end

     0   :  { %s22_s0 = inlined_call_operand.vmem [shape: f32[4], index: 0, kind: input, shape index: {}]   ;;  %s23_s1 = inlined_call_operand.vmem [shape: f32[2,4], index: 1, kind: output, shape index: {}]  }
   0x1   :  { %v4_v0 = vld [vmem:[%s22_s0] ss:$0 sm:$0xff] }
   0x2   :  { %5 = vst [vmem:[%s23_s1] sm:$0x3] %v4_v0 }

// kernel: upconv_forward.3
= control target key start
LH: loop header
LB: loop body
LE: loop exit
PB: predicated region body
PF: predicated region fallthrough
CT: control target
= control target key end

     0   :  { %s644_s12 = smov 0   ;;  %s769_s0 = inlined_call_operand.vmem [shape: f32[2,8,8,4], index: 0, kind: input, shape index: {}]   ;;  %s770_s1 = inlined_call_operand.vmem [shape: f32[2,4,8], index: 1, kind: input, shape index: {}]   ;;  %s771_s2 = inlined_call_operand.vmem [shape: f32[2,64,8], index: 2, kind: input, shape index: {}]   ;;  %s772_s3 = inlined_call_operand.vmem [shape: f32[2,8,2,8,8], index: 3, kind: output, shape index: {}]  }
   0x1 LB: > { %s514_s13 = sadd.s32 4294967295, %s622_s12   ;;  %p518_p0 = scmp.ge.s32.totalorder %s622_s12, 1  ;;  %s622_s12 = sphi %s644_s12, %s13_s12  }
   0x2   : > { %p137_p1 = scmp.lt.s32.totalorder %s622_s12, 3 }
   0x4   : > { %p138_p2 = pnand %p518_p0, %p137_p1 }
   0x5   : > { %v179_v0 = vld [vmem:[%s770_s1] sm:$0xf] (!%p138_p2)  ;;  %vm213_vm0 = vcmask (!%p138_p2), 1043456   ;;  %v532_v1 = vld [vmem:[%s770_s1 + $0x4] sm:$0xf] (!%p138_p2)  ;;  %p161_p3 = scmp.lt.s32.totalorder (!%p138_p2), %s514_s13, 1 }
   0x6   : > { %141 = sbr.rel (%p138_p2) target bundleno = 246 (0xf6), region = 32  ;;  %580 = vmatprep.subr.msk.mxu0 (!%p138_p2), %vm213_vm0, %v179_v0  ;;  %594 = vmatprep.subr.msk.mxu1 (!%p138_p2), %vm213_vm0, %v532_v1  ;;  %vm188_vm1 = vcmask (!%p138_p2), 31744   ;;  %v181_v10 = vld [vmem:[%s771_s2 + $0x8] sm:$0xff] (!%p138_p2)  ;;  %v180_v12 = vld [vmem:[%s771_s2] sm:$0xff] (!%p138_p2)  ;;  %vm322_vm2 = vcmask (!%p138_p2), 64512   ;;  %v183_v22 = vld [vmem:[%s771_s2 + $0x18] sm:$0xff] (!%p138_p2) }
   0x7   : > { %581 = vmatpush3.msk.msra.mxu0 (!%p138_p2), %vm213_vm0, %v179_v0  ;;  %595 = vmatpush3.msk.msra.mxu1 (!%p138_p2), %vm213_vm0, %v532_v1  ;;  %v534_v11 = vld [vmem:[%s771_s2 + $0x48] sm:$0xff] (!%p138_p2)  ;;  %v533_v13 = vld [vmem:[%s771_s2 + $0x40] sm:$0xff] (!%p138_p2)  ;;  %v536_v23 = vld [vmem:[%s771_s2 + $0x58] sm:$0xff] (!%p138_p2) }
   0x8   : > { %v182_v24 = vld [vmem:[%s771_s2 + $0x10] sm:$0xff] (!%p138_p2)  ;;  %v185_v34 = vld [vmem:[%s771_s2 + $0x28] sm:$0xff] (!%p138_p2)  ;;  %v184_v36 = vld [vmem:[%s771_s2 + $0x20] sm:$0xff] (!%p138_p2) }
   0x9   : > { %v535_v25 = vld [vmem:[%s771_s2 + $0x50] sm:$0xff] (!%p138_p2)  ;;  %v538_v35 = vld [vmem:[%s771_s2 + $0x68] sm:$0xff] (!%p138_p2)  ;;  %v537_v37 = vld [vmem:[%s771_s2 + $0x60] sm:$0xff] (!%p138_p2) }
   0xa   : > { %v187_v46 = vld [vmem:[%s771_s2 + $0x38] sm:$0xff] (!%p138_p2)  ;;  %v186_v48 = vld [vmem:[%s771_s2 + $0x30] sm:$0xff] (!%p138_p2) }
   0xb   : > { %v540_v47 = vld [vmem:[%s771_s2 + $0x78] sm:$0xff] (!%p138_p2)  ;;  %v539_v49 = vld [vmem:[%s771_s2 + $0x70] sm:$0xff] (!%p138_p2) }
   0xd   : > { %s774_s13 = smov (!%p161_p3, %s514_s13), 1 }
   0xe   : > { %s560_s18 = sshll.u32 %s774_s13, 6  ;;  %s561_s22 = sshll.u32 %s774_s13, 7 }
   0xf   : > { %s165_s21 = scalar_lea.vmem %s769_s0, %s560_s18  ;;  %s696_s6 = scalar_lea.vmem %s772_s3, %s561_s22 }
  0x10   : > { %v171_v2 = vld [vmem:[%s165_s21] sm:$0xff]  ;;  %v172_v3 = vld [vmem:[%s165_s21 + $0x8] sm:$0xff]  ;;  %v173_v4 = vld [vmem:[%s165_s21 + $0x10] sm:$0xff] }
  0x11   : > { %582 = vmatprep.mubr.msk.f32.mxu0 %vm188_vm1, %v171_v2  ;;  %596 = vmatprep.mubr.msk.f32.mxu1 %vm188_vm1, %v171_v2  ;;  %v174_v5 = vld [vmem:[%s165_s21 + $0x18] sm:$0xff]  ;;  %v175_v6 = vld [vmem:[%s165_s21 + $0x20] sm:$0xff]  ;;  %v176_v7 = vld [vmem:[%s165_s21 + $0x28] sm:$0xff] }
  0x12   : > { %583 = vmatmul.mubr.msk.f32.vlgmr.msra.gmra.mrb[0].mxu0 %vm188_vm1, %v172_v3  ;;  %597 = vmatmul.mubr.msk.f32.vlgmr.msra.gmra.mrb[0].mxu1 %vm188_vm1, %v172_v3  ;;  %v177_v8 = vld [vmem:[%s165_s21 + $0x30] sm:$0xff]  ;;  %v178_v9 = vld [vmem:[%s165_s21 + $0x38] sm:$0xff] }
  0x13   : > { %585 = vmatprep.mubr.msk.f32.mxu0 %vm188_vm1, %v173_v4  ;;  %599 = vmatprep.mubr.msk.f32.mxu1 %vm188_vm1, %v173_v4 }
  0x16   : > { %586 = vmatmul.mubr.msk.f32.gmra.mrb[2].mxu0 %vm188_vm1, %v174_v5  ;;  %600 = vmatmul.mubr.msk.f32.gmra.mrb[2].mxu1 %vm188_vm1, %v174_v5 }
  0x17   : > { %588 = vmatprep.mubr.msk.f32.mxu0 %vm188_vm1, %v175_v6  ;;  %602 = vmatprep.mubr.msk.f32.mxu1 %vm188_vm1, %v175_v6 }
  0x1a   : > { %589 = vmatmul.mubr.msk.f32.gmra.mrb[4].mxu0 %vm188_vm1, %v176_v7  ;;  %603 = vmatmul.mubr.msk.f32.gmra.mrb[4].mxu1 %vm188_vm1, %v176_v7 }
  0x1b   : > { %591 = vmatprep.mubr.msk.f32.mxu0 %vm188_vm1, %v177_v8  ;;  %605 = vmatprep.mubr.msk.f32.mxu1 %vm188_vm1, %v177_v8 }
  0x1e   : > { %592 = vmatmul.mubr.msk.f32.gmra.mrb[6].mxu0 %vm188_vm1, %v178_v9  ;;  %606 = vmatmul.mubr.msk.f32.gmra.mrb[6].mxu1 %vm188_vm1, %v178_v9 }
  0xe5   : > { %v584_v14 = vpop.f32.mrb[0].mxu0  ;;  %v598_v15 = vpop.f32.mrb[0].mxu1 }
  0xe6   : > { %v289_v16 = vadd.f32 %v584_v14, %v181_v10  ;;  %v417_v17 = vadd.f32 %v598_v15, %v534_v11  ;;  %v283_v18 = vpop.f32.mrb[1].mxu0  ;;  %v411_v19 = vpop.f32.mrb[1].mxu1 }
  0xe7   : > { %v284_v20 = vadd.f32 %v283_v18, %v180_v12  ;;  %v412_v21 = vadd.f32 %v533_v13, %v411_v19 }
  0xe8   : > { %324 = vst.msk [vmem:[%s696_s6 + $0x10] sm:$0xff] %vm322_vm2, %v289_v16  ;;  %551 = vst.msk [vmem:[%s696_s6 + $0x18] sm:$0xff] %vm322_vm2, %v417_v17 }
  0xe9   : > { %323 = vst.msk [vmem:[%s696_s6] sm:$0xff] %vm322_vm2, %v284_v20  ;;  %550 = vst.msk [vmem:[%s696_s6 + $0x8] sm:$0xff] %vm322_vm2, %v412_v21  ;;  %v587_v26 = vpop.f32.mrb[2].mxu0  ;;  %v601_v27 = vpop.f32.mrb[2].mxu1 }
  0xea   : > { %v299_v28 = vadd.f32 %v587_v26, %v183_v22  ;;  %v427_v29 = vadd.f32 %v601_v27, %v536_v23  ;;  %v293_v30 = vpop.f32.mrb[3].mxu0  ;;  %v421_v31 = vpop.f32.mrb[3].mxu1 }
  0xeb   : > { %v294_v32 = vadd.f32 %v293_v30, %v182_v24  ;;  %v422_v33 = vadd.f32 %v535_v25, %v421_v31 }
  0xec   : > { %326 = vst.msk [vmem:[%s696_s6 + $0x30] sm:$0xff] %vm322_vm2, %v299_v28  ;;  %553 = vst.msk [vmem:[%s696_s6 + $0x38] sm:$0xff] %vm322_vm2, %v427_v29 }
  0xed   : > { %325 = vst.msk [vmem:[%s696_s6 + $0x20] sm:$0xff] %vm322_vm2, %v294_v32  ;;  %552 = vst.msk [vmem:[%s696_s6 + $0x28] sm:$0xff] %vm322_vm2, %v422_v33  ;;  %v590_v38 = vpop.f32.mrb[4].mxu0  ;;  %v604_v39 = vpop.f32.mrb[4].mxu1 }
  0xee   : > { %v309_v40 = vadd.f32 %v590_v38, %v185_v34  ;;  %v437_v41 = vadd.f32 %v604_v39, %v538_v35  ;;  %v303_v42 = vpop.f32.mrb[5].mxu0  ;;  %v431_v43 = vpop.f32.mrb[5].mxu1 }
  0xef   : > { %v304_v44 = vadd.f32 %v303_v42, %v184_v36  ;;  %v432_v45 = vadd.f32 %v537_v37, %v431_v43 }
  0xf0   : > { %328 = vst.msk [vmem:[%s696_s6 + $0x50] sm:$0xff] %vm322_vm2, %v309_v40  ;;  %555 = vst.msk [vmem:[%s696_s6 + $0x58] sm:$0xff] %vm322_vm2, %v437_v41 }
  0xf1   : > { %327 = vst.msk [vmem:[%s696_s6 + $0x40] sm:$0xff] %vm322_vm2, %v304_v44  ;;  %554 = vst.msk [vmem:[%s696_s6 + $0x48] sm:$0xff] %vm322_vm2, %v432_v45  ;;  %v593_v50 = vpop.f32.mrb[6].mxu0  ;;  %v607_v51 = vpop.f32.mrb[6].mxu1 }
  0xf2   : > { %v319_v52 = vadd.f32 %v593_v50, %v187_v46  ;;  %v447_v53 = vadd.f32 %v607_v51, %v540_v47  ;;  %v313_v54 = vpop.f32.mrb[7].mxu0  ;;  %v441_v55 = vpop.f32.mrb[7].mxu1 }
  0xf3   : > { %v314_v56 = vadd.f32 %v313_v54, %v186_v48  ;;  %v442_v57 = vadd.f32 %v539_v49, %v441_v55 }
  0xf4   : > { %330 = vst.msk [vmem:[%s696_s6 + $0x70] sm:$0xff] %vm322_vm2, %v319_v52  ;;  %557 = vst.msk [vmem:[%s696_s6 + $0x78] sm:$0xff] %vm322_vm2, %v447_v53 }
  0xf5   : > { %329 = vst.msk [vmem:[%s696_s6 + $0x60] sm:$0xff] %vm322_vm2, %v314_v56  ;;  %556 = vst.msk [vmem:[%s696_s6 + $0x68] sm:$0xff] %vm322_vm2, %v442_v57 }
  0xf6 PF: > { %s13_s12 = sadd.s32 1, %s622_s12  }
  0xf7   : > { %p10_p4 = scmp.ge.s32.totalorder %s13_s12, 4  }
  0xf9   :  { %12 = sbr.rel (!%p10_p4) target bundleno = 1 (0x1), region = 65 }

// kernel: upconv_forward.4
= control target key start
LH: loop header
LB: loop body
LE: loop exit
PB: predicated region body
PF: predicated region fallthrough
CT: control target
= control target key end

     0   :  { %s1577_s15 = smov 0   ;;  %s1579_s16 = smov 0   ;;  %s2367_s0 = inlined_call_operand.vmem [shape: f32[2,18,18,8], index: 0, kind: input, shape index: {}]   ;;  %s2368_s1 = inlined_call_operand.vmem [shape: f32[72,8], index: 1, kind: input, shape index: {}]   ;;  %s2369_s2 = inlined_call_operand.vmem [shape: f32[1,8], index: 2, kind: input, shape index: {}]   ;;  %s2370_s3 = inlined_call_operand.vmem [shape: f32[16,16,8], index: 3, kind: input, shape index: {}]   ;;  %s2371_s4 = inlined_call_operand.vmem [shape: f32[2,16,16,8], index: 4, kind: output, shape index: {}]  }
   0x1   :  { %s1581_s17 = smov 0   ;;  %s1583_s18 = smov 0  }
   0x2   :  { %s1585_s19 = smov 0  }
   0x3 LB: > { %s23_s20 = sadd.s32 1, %s1534_s17  ;;  %s26_s21 = sadd.s32 1, %s1538_s18  ;;  %s1542_s19 = sphi %s1585_s19, %s14_s19   ;;  %s1538_s18 = sphi %s1583_s18, %s2402_s18   ;;  %s1534_s17 = sphi %s1581_s17, %s2401_s17   ;;  %s1530_s16 = sphi %s1579_s16, %s2400_s16   ;;  %s1526_s15 = sphi %s1577_s15, %s2399_s15  }
   0x4   : > { %p24_p0 = scmp.ge.s32.totalorder %s23_s20, 2  ;;  %p1331_p1 = scmp.ge.s32.totalorder %s1542_s19, 1 }
   0x5   : > { %p188_p2 = scmp.lt.s32.totalorder %s1542_s19, 5 }
   0x6   : > { %s2404_s20 = smov (%p24_p0, %s23_s20), 0  ;;  %s2406_s21 = smov (!%p24_p0, %s26_s21), %s1538_s18 }
   0x7   : > { %p189_p3 = pnand %p1331_p1, %p188_p2  ;;  %p28_p4 = scmp.ge.s32.totalorder %s2406_s21, 2 }
   0x9   : > { %s2408_s21 = smov (%p28_p4, %s2406_s21), 0  ;;  %192 = sbr.rel (%p189_p3) target bundleno = 616 (0x268), region = 36 }
  0x10   : > { %p225_p5 = scmp.lt.s32.totalorder %s1530_s16, 1  ;;  %s1341_s22 = smul.u32 192, %s1526_s15  ;;  %vm305_vm0 = vcmask 1046528   ;;  %vm346_vm1 = vcmask 1045504   ;;  %v933_v62 = vld [vmem:[%s2368_s1] sm:$0xff]  ;;  %v934_v63 = vld [vmem:[%s2368_s1 + $0x8] sm:$0xff] }
  0x11   : > { %s1544_s28 = smov 8   ;;  %s1545_s29 = smov 16   ;;  %vm797_vm2 = vcmask 64512   ;;  %vm814_vm3 = vcmask 130048   ;;  %vm831_vm4 = vcmask 195584   ;;  %vm848_vm5 = vcmask 261120  }
  0x12   : > { %s2410_s16 = smov (!%p225_p5, %s1530_s16), 1  ;;  %s1546_s30 = smov 24   ;;  %vm865_vm6 = vcmask 326656   ;;  %vm882_vm7 = vcmask 392192   ;;  %vm899_vm8 = vcmask 457728   ;;  %vm916_vm9 = vcmask 523264  }
  0x13   : > { %s1455_s23 = smul.u32 432, %s2410_s16  ;;  %s1547_s5 = smov 32   ;;  %vm942_vm10 = vcmask 588800  }
  0x14   : > { %s1548_s6 = smov 40   ;;  %s1549_s7 = smov 48  }
  0x15   : > { %s229_s26 = scalar_lea.vmem %s2367_s0, %s1455_s23  ;;  %s1550_s12 = smov 56  }
  0x16   : > { %s1616_s27 = scalar_lea.vmem %s229_s26, %s1341_s22  ;;  %s1551_s14 = smov 64  }
  0x17   : > { %v1619_v0 = vld [vmem:[%s1616_s27 + $0x8] sm:$0xff]  ;;  %v253_v1 = vld [vmem:[%s1616_s27 + $0x10] sm:$0x3]  ;;  %v1623_v2 = vld [vmem:[%s1616_s27] sm:$0xff] }
  0x18   : > { %v307_v3 = vrot.slane %v1619_v0, 1  ;;  %v309_v4 = vrot.slane %v253_v1, 1  ;;  %v306_v5 = vrot.slane %v1623_v2, 1  ;;  %v1628_v6 = vld [vmem:[%s1616_s27 + $0x68] sm:$0xff]  ;;  %v265_v7 = vld [vmem:[%s1616_s27 + $0x70] sm:$0x3] }
  0x19   : > { %v327_v8 = vrot.slane %v1628_v6, 1  ;;  %v329_v9 = vrot.slane %v265_v7, 1  ;;  %v1633_v10 = vld [vmem:[%s1616_s27 + $0x60] sm:$0xff]  ;;  %v368_v14 = vrot.slane %v1628_v6, 2  ;;  %v347_v15 = vrot.slane %v1623_v2, 2  ;;  %v1669_v26 = vld [vmem:[%s1616_s27 + $0x78] sm:$0xff] }
  0x1a   : > { %v310_v11 = vsel %vm305_vm0, %v307_v3, %v309_v4  ;;  %v308_v12 = vsel %vm305_vm0, %v306_v5, %v307_v3  ;;  %v326_v13 = vrot.slane %v1633_v10, 1  ;;  %v367_v18 = vrot.slane %v1633_v10, 2  ;;  %v1672_v27 = vld [vmem:[%s1616_s27 + $0x18] sm:$0xff]  ;;  %v1675_v28 = vld [vmem:[%s1616_s27 + $0x80] sm:$0xff]  ;;  %v268_v36 = vld [vmem:[%s1616_s27 + $0x88] sm:$0x3] }
  0x1b   : > { %415 = vrot.lane.b32.xlu1 %v310_v11, %s1544_s28  ;;  %413 = vrot.lane.b32.xlu0 %v308_v12, %s1544_s28  ;;  %v1643_v16 = vsel %vm305_vm0, %v327_v8, %v329_v9  ;;  %v348_v19 = vrot.slane %v1619_v0, 2  ;;  %v370_v22 = vrot.slane %v265_v7, 2  ;;  %v350_v23 = vrot.slane %v253_v1, 2  ;;  %v1678_v29 = vld [vmem:[%s1616_s27 + $0x20] sm:$0xff]  ;;  %v256_v37 = vld [vmem:[%s1616_s27 + $0x28] sm:$0x3] }
  0x1c   : > { %v1646_v17 = vsel %vm305_vm0, %v326_v13, %v327_v8  ;;  %v1655_v20 = vsel %vm346_vm1, %v367_v18, %v368_v14  ;;  %v331_v30 = vrot.slane %v1669_v26, 1  ;;  %v332_v31 = vrot.slane %v1675_v28, 1  ;;  %v1736_v52 = vld [vmem:[%s1616_s27 + $0x90] sm:$0xff]  ;;  %v1749_v54 = vld [vmem:[%s1616_s27 + $0x98] sm:$0xff]  ;;  %v271_v3 = vld [vmem:[%s1616_s27 + $0xa0] sm:$0x3] }
  0x1d   : > { %v349_v21 = vsel %vm346_vm1, %v347_v15, %v348_v19  ;;  %v1662_v24 = vsel %vm346_vm1, %v368_v14, %v370_v22  ;;  %v351_v25 = vsel %vm346_vm1, %v348_v19, %v350_v23  ;;  %v311_v32 = vrot.slane %v1672_v27, 1  ;;  %v1739_v53 = vld [vmem:[%s1616_s27 + $0x30] sm:$0xff]  ;;  %v1752_v55 = vld [vmem:[%s1616_s27 + $0x38] sm:$0xff]  ;;  %v259_v4 = vld [vmem:[%s1616_s27 + $0x40] sm:$0x3] }
  0x1e   : > { %v312_v33 = vrot.slane %v1678_v29, 1  ;;  %v1693_v34 = vsel %vm305_vm0, %v331_v30, %v332_v31  ;;  %v334_v38 = vrot.slane %v268_v36, 1  ;;  %v314_v39 = vrot.slane %v256_v37, 1  ;;  %2385 = vst [vmem:[#allocation6_spill] sm:$0xff] %v1752_v55  ;;  %v935_v5 = vld [vmem:[%s2368_s1 + $0x10] sm:$0xff]  ;;  %v936_v7 = vld [vmem:[%s2368_s1 + $0x18] sm:$0xff] }
  0x1f   : > { %431 = vrot.lane.b32.xlu1 %v1643_v16, %s1544_s28  ;;  %429 = vrot.lane.b32.xlu0 %v1646_v17, %s1544_s28  ;;  %2381 = vst [vmem:[#allocation2_spill] sm:$0xff] %v1693_v34  ;;  %v372_v40 = vrot.slane %v1669_v26, 2  ;;  %v373_v41 = vrot.slane %v1675_v28, 2  ;;  %v352_v44 = vrot.slane %v1672_v27, 2  ;;  %v353_v45 = vrot.slane %v1678_v29, 2  ;;  %v937_v15 = vld [vmem:[%s2368_s1 + $0x20] sm:$0xff] }
  0x20   : > { %v313_v35 = vsel %vm305_vm0, %v311_v32, %v312_v33  ;;  %v1707_v42 = vsel %vm305_vm0, %v332_v31, %v334_v38  ;;  %v315_v43 = vsel %vm305_vm0, %v312_v33, %v314_v39  ;;  %v375_v48 = vrot.slane %v268_v36, 2  ;;  %v938_v18 = vld [vmem:[%s2368_s1 + $0x28] sm:$0xff]  ;;  %v940_v30 = vld [vmem:[%s2368_s1 + $0x38] sm:$0xff] }
  0x21   : > { %2382 = vst [vmem:[#allocation3_spill] sm:$0xff] %v1707_v42  ;;  %v1716_v46 = vsel %vm346_vm1, %v372_v40, %v373_v41  ;;  %v354_v47 = vsel %vm346_vm1, %v352_v44, %v353_v45  ;;  %v355_v49 = vrot.slane %v256_v37, 2  ;;  %v336_v56 = vrot.slane %v1736_v52, 1  ;;  %v1834_v40 = vld [vmem:[%s1616_s27 + $0xa8] sm:$0xff] }
  0x22   : > { %2383 = vst [vmem:[#allocation4_spill] sm:$0xff] %v1716_v46  ;;  %v1729_v50 = vsel %vm346_vm1, %v373_v41, %v375_v48  ;;  %v337_v57 = vrot.slane %v1749_v54, 1  ;;  %v316_v58 = vrot.slane %v1739_v53, 1  ;;  %v317_v59 = vrot.slane %v1752_v55, 1  ;;  %2386 = vst [vmem:[#allocation7_spill] sm:$0xff] %v1834_v40  ;;  %v1837_v41 = vld [vmem:[%s1616_s27 + $0x48] sm:$0xff] }
  0x23   : > { %477 = vrot.lane.b32.xlu1 %v1655_v20, %s1545_s29  ;;  %461 = vrot.lane.b32.xlu0 %v349_v21, %s1545_s29  ;;  %2384 = vst [vmem:[#allocation5_spill] sm:$0xff] %v1729_v50  ;;  %v356_v51 = vsel %vm346_vm1, %v353_v45, %v355_v49  ;;  %v1429_v1 = vpack.c.bf16 %v934_v63, %v933_v62  ;;  %v339_v8 = vrot.slane %v271_v3, 1  ;;  %v319_v9 = vrot.slane %v259_v4, 1 }
  0x24   : > { %v338_v60 = vsel %vm305_vm0, %v336_v56, %v337_v57  ;;  %v318_v61 = vsel %vm305_vm0, %v316_v58, %v317_v59  ;;  %v1433_v11 = vpack.c.bf16 %v936_v7, %v935_v5  ;;  %v377_v12 = vrot.slane %v1736_v52, 2  ;;  %2387 = vst [vmem:[#allocation8_spill] sm:$0xff] %v1837_v41  ;;  %v1861_v56 = vld [vmem:[%s1616_s27 + $0x50] sm:$0xff]  ;;  %v274_v5 = vld [vmem:[%s1616_s27 + $0xb8] sm:$0x3] }
  0x25   : > { %1430 = vmatprep.subr.bf16.mxu0 %v1429_v1  ;;  %1445 = vmatprep.subr.bf16.mxu1 %v1429_v1  ;;  %v378_v13 = vrot.slane %v1749_v54, 2  ;;  %v357_v14 = vrot.slane %v1739_v53, 2  ;;  %v340_v19 = vsel %vm305_vm0, %v337_v57, %v339_v8  ;;  %v320_v21 = vsel %vm305_vm0, %v317_v59, %v319_v9  ;;  %2389 = vst [vmem:[#allocation10_spill] sm:$0xff] %v1861_v56  ;;  %v262_v7 = vld [vmem:[%s1616_s27 + $0x58] sm:$0x3] }
  0x26   : > { %1432 = vmatpush3.bf16.msra.mxu0 %v1429_v1  ;;  %1450 = vmatpush3.bf16.msra.mxu1 %v1429_v1  ;;  %v358_v22 = vrot.slane %v1752_v55, 2  ;;  %v1437_v23 = vpack.c.bf16 %v938_v18, %v937_v15  ;;  %v380_v36 = vrot.slane %v271_v3, 2  ;;  %v360_v37 = vrot.slane %v259_v4, 2 }
  0x27   : > { %479 = vrot.lane.b32.xlu1 %v1662_v24, %s1545_s29  ;;  %463 = vrot.lane.b32.xlu0 %v351_v25, %s1545_s29  ;;  %v939_v25 = vld [vmem:[%s2368_s1 + $0x30] sm:$0xff]  ;;  %v379_v31 = vsel %vm346_vm1, %v377_v12, %v378_v13  ;;  %v341_v57 = vrot.slane %v1834_v40, 1  ;;  %v321_v59 = vrot.slane %v1837_v41, 1  ;;  %v324_v12 = vrot.slane %v262_v7, 1 }
  0x28   : > { %1434 = vmatprep.subr.bf16.mxu0 %v1433_v11  ;;  %1446 = vmatprep.subr.bf16.mxu1 %v1433_v11  ;;  %v359_v32 = vsel %vm346_vm1, %v357_v14, %v358_v22  ;;  %v1441_v33 = vpack.c.bf16 %v940_v30, %v939_v25  ;;  %v381_v38 = vsel %vm346_vm1, %v378_v13, %v380_v36 }
  0x29   : > { %v361_v39 = vsel %vm346_vm1, %v358_v22, %v360_v37  ;;  %v362_v22 = vrot.slane %v1837_v41, 2 }
  0x2a   : > { %1436 = vmatpush3.bf16.msra.mxu0 %v1433_v11  ;;  %1451 = vmatpush3.bf16.msra.mxu1 %v1433_v11  ;;  %v344_v11 = vrot.slane %v274_v5, 1 }
  0x2b   : > { %525 = vrot.lane.b32.xlu1 %v1669_v26, %s1546_s30  ;;  %509 = vrot.lane.b32.xlu0 %v1672_v27, %s1546_s30 }
  0x2c   : > { %1438 = vmatprep.subr.bf16.mxu0 %v1437_v23  ;;  %1447 = vmatprep.subr.bf16.mxu1 %v1437_v23 }
  0x2e   : > { %1440 = vmatpush3.bf16.msra.mxu0 %v1437_v23  ;;  %1452 = vmatpush3.bf16.msra.mxu1 %v1437_v23  ;;  %v363_v23 = vrot.slane %v1861_v56, 2 }
  0x2f   : > { %527 = vrot.lane.b32.xlu1 %v1675_v28, %s1546_s30  ;;  %511 = vrot.lane.b32.xlu0 %v1678_v29, %s1546_s30 }
  0x30   : > { %1442 = vmatprep.subr.bf16.mxu0 %v1441_v33  ;;  %1448 = vmatprep.subr.bf16.mxu1 %v1441_v33 }
  0x32   : > { %1444 = vmatpush3.bf16.msra.mxu0 %v1441_v33  ;;  %1453 = vmatpush3.bf16.msra.mxu1 %v1441_v33 }
  0x33   : > { %573 = vrot.lane.b32.xlu1 %v1693_v34, %s1547_s5  ;;  %557 = vrot.lane.b32.xlu0 %v313_v35, %s1547_s5 }
  0x37   : > { %433 = vrot.lane.b32.xlu1 %v1693_v34, %s1544_s28  ;;  %417 = vrot.lane.b32.xlu0 %v313_v35, %s1544_s28  ;;  %v941_v35 = vld [vmem:[%s2368_s1 + $0x40] sm:$0xff] }
  0x38   : > { %1403 = vmatprep.subr.mxu0 %v941_v35  ;;  %1449 = vmatprep.subr.mxu1 %v941_v35 }
  0x39   : > { %1404 = vmatpush3.msra.mxu0 %v941_v35  ;;  %1454 = vmatpush3.msra.mxu1 %v941_v35 }
  0x3b   : > { %575 = vrot.lane.b32.xlu1 %v1707_v42, %s1547_s5  ;;  %559 = vrot.lane.b32.xlu0 %v315_v43, %s1547_s5 }
  0x3f   : > { %621 = vrot.lane.b32.xlu1 %v1716_v46, %s1548_s6  ;;  %605 = vrot.lane.b32.xlu0 %v354_v47, %s1548_s6 }
  0x43   : > { %435 = vrot.lane.b32.xlu1 %v1707_v42, %s1544_s28  ;;  %419 = vrot.lane.b32.xlu0 %v315_v43, %s1544_s28 }
  0x47   : > { %481 = vrot.lane.b32.xlu1 %v1716_v46, %s1545_s29  ;;  %465 = vrot.lane.b32.xlu0 %v354_v47, %s1545_s29 }
  0x4b   : > { %623 = vrot.lane.b32.xlu1 %v1729_v50, %s1548_s6  ;;  %607 = vrot.lane.b32.xlu0 %v356_v51, %s1548_s6 }
  0x4f   : > { %669 = vrot.lane.b32.xlu1 %v1736_v52, %s1549_s7  ;;  %653 = vrot.lane.b32.xlu0 %v1739_v53, %s1549_s7 }
  0x53   : > { %483 = vrot.lane.b32.xlu1 %v1729_v50, %s1545_s29  ;;  %467 = vrot.lane.b32.xlu0 %v356_v51, %s1545_s29  ;;  %v1858_v51 = vld [vmem:[%s1616_s27 + $0xb0] sm:$0xff] }
  0x54   : > { %2388 = vst [vmem:[#allocation9_spill] sm:$0xff] %v1858_v51  ;;  %v342_v58 = vrot.slane %v1858_v51, 1 }
  0x56   : > { %v343_v63 = vsel %vm305_vm0, %v341_v57, %v342_v58  ;;  %v345_v15 = vsel %vm305_vm0, %v342_v58, %v344_v11  ;;  %v385_v57 = vrot.slane %v274_v5, 2  ;;  %v365_v58 = vrot.slane %v262_v7, 2 }
  0x57   : > { %529 = vrot.lane.b32.xlu1 %v1736_v52, %s1546_s30  ;;  %513 = vrot.lane.b32.xlu0 %v1739_v53, %s1546_s30 }
  0x5b   : > { %671 = vrot.lane.b32.xlu1 %v1749_v54, %s1549_s7  ;;  %655 = vrot.lane.b32.xlu0 %v1752_v55, %s1549_s7 }
  0x5f   : > { %717 = vrot.lane.b32.xlu1 %v338_v60, %s1550_s12  ;;  %701 = vrot.lane.b32.xlu0 %v318_v61, %s1550_s12 }
  0x63   : > { %531 = vrot.lane.b32.xlu1 %v1749_v54, %s1546_s30  ;;  %515 = vrot.lane.b32.xlu0 %v1752_v55, %s1546_s30 }
  0x67   : > { %577 = vrot.lane.b32.xlu1 %v338_v60, %s1547_s5  ;;  %561 = vrot.lane.b32.xlu0 %v318_v61, %s1547_s5 }
  0x6b   : > { %719 = vrot.lane.b32.xlu1 %v340_v19, %s1550_s12  ;;  %703 = vrot.lane.b32.xlu0 %v320_v21, %s1550_s12 }
  0x6f   : > { %765 = vrot.lane.b32.xlu1 %v379_v31, %s1551_s14  ;;  %749 = vrot.lane.b32.xlu0 %v359_v32, %s1551_s14 }
  0x73   : > { %437 = vrot.lane.b32.xlu1 %v338_v60, %s1544_s28  ;;  %421 = vrot.lane.b32.xlu0 %v318_v61, %s1544_s28  ;;  %v322_v60 = vrot.slane %v1861_v56, 1 }
  0x75   : > { %v323_v1 = vsel %vm305_vm0, %v321_v59, %v322_v60  ;;  %v325_v18 = vsel %vm305_vm0, %v322_v60, %v324_v12 }
  0x77   : > { %579 = vrot.lane.b32.xlu1 %v340_v19, %s1547_s5  ;;  %563 = vrot.lane.b32.xlu0 %v320_v21, %s1547_s5 }
  0x7b   : > { %625 = vrot.lane.b32.xlu1 %v379_v31, %s1548_s6  ;;  %609 = vrot.lane.b32.xlu0 %v359_v32, %s1548_s6 }
  0x7f   : > { %767 = vrot.lane.b32.xlu1 %v381_v38, %s1551_s14  ;;  %751 = vrot.lane.b32.xlu0 %v361_v39, %s1551_s14 }
  0x83   : > { %439 = vrot.lane.b32.xlu1 %v340_v19, %s1544_s28  ;;  %423 = vrot.lane.b32.xlu0 %v320_v21, %s1544_s28  ;;  %v382_v19 = vrot.slane %v1834_v40, 2  ;;  %v383_v21 = vrot.slane %v1858_v51, 2 }
  0x87   : > { %485 = vrot.lane.b32.xlu1 %v379_v31, %s1545_s29  ;;  %469 = vrot.lane.b32.xlu0 %v359_v32, %s1545_s29  ;;  %v384_v31 = vsel %vm346_vm1, %v382_v19, %v383_v21  ;;  %v364_v32 = vsel %vm346_vm1, %v362_v22, %v363_v23 }
  0x8b   : > { %627 = vrot.lane.b32.xlu1 %v381_v38, %s1548_s6  ;;  %611 = vrot.lane.b32.xlu0 %v361_v39, %s1548_s6 }
  0x8d   : > { %v1839_v43 = vpop.permute.xlu1 %415  ;;  %v1841_v44 = vpop.permute.xlu0 %413 }
  0x8f   : > { %673 = vrot.lane.b32.xlu1 %v1834_v40, %s1549_s7  ;;  %657 = vrot.lane.b32.xlu0 %v1837_v41, %s1549_s7 }
  0x91   : > { %v1847_v45 = vpop.permute.xlu1 %431  ;;  %v1849_v47 = vpop.permute.xlu0 %429 }
  0x93   : > { %487 = vrot.lane.b32.xlu1 %v381_v38, %s1545_s29  ;;  %471 = vrot.lane.b32.xlu0 %v361_v39, %s1545_s29 }
  0x95   : > { %v1853_v48 = vpop.permute.xlu1 %477  ;;  %v1855_v49 = vpop.permute.xlu0 %461 }
  0x97   : > { %533 = vrot.lane.b32.xlu1 %v1834_v40, %s1546_s30  ;;  %517 = vrot.lane.b32.xlu0 %v1837_v41, %s1546_s30 }
  0x99   : > { %v1871_v61 = vpop.permute.xlu1 %479  ;;  %v1873_v62 = vpop.permute.xlu0 %463 }
  0x9b   : > { %675 = vrot.lane.b32.xlu1 %v1858_v51, %s1549_s7  ;;  %659 = vrot.lane.b32.xlu0 %v1861_v56, %s1549_s7 }
  0x9d   : > { %v1881_v3 = vpop.permute.xlu1 %525  ;;  %v1883_v4 = vpop.permute.xlu0 %509 }
  0x9f   : > { %721 = vrot.lane.b32.xlu1 %v343_v63, %s1550_s12  ;;  %705 = vrot.lane.b32.xlu0 %v323_v1, %s1550_s12 }
  0xa1   : > { %v1889_v8 = vpop.permute.xlu1 %527  ;;  %v1891_v9 = vpop.permute.xlu0 %511 }
  0xa3   : > { %535 = vrot.lane.b32.xlu1 %v1858_v51, %s1546_s30  ;;  %519 = vrot.lane.b32.xlu0 %v1861_v56, %s1546_s30  ;;  %v1973_v51 = vld [vmem:[%s1616_s27 + $0xc8] sm:$0xff] }
  0xa4   : > { %v391_v46 = vrot.slane %v1973_v51, 1 }
  0xa5   : > { %v1897_v13 = vpop.permute.xlu1 %573  ;;  %v1899_v14 = vpop.permute.xlu0 %557 }
  0xa7   : > { %581 = vrot.lane.b32.xlu1 %v343_v63, %s1547_s5  ;;  %565 = vrot.lane.b32.xlu0 %v323_v1, %s1547_s5 }
  0xa9   : > { %v434_v25 = vpop.permute.xlu1 %433  ;;  %v418_v30 = vpop.permute.xlu0 %417 }
  0xaa   : > { %v808_v41 = vsel %vm797_vm2, %v1669_v26, %v434_v25  ;;  %v800_v40 = vsel %vm797_vm2, %v1672_v27, %v418_v30 }
  0xab   : > { %723 = vrot.lane.b32.xlu1 %v345_v15, %s1550_s12  ;;  %707 = vrot.lane.b32.xlu0 %v325_v18, %s1550_s12 }
  0xad   : > { %v1913_v33 = vpop.permute.xlu1 %575  ;;  %v1915_v35 = vpop.permute.xlu0 %559 }
  0xaf   : > { %769 = vrot.lane.b32.xlu1 %v384_v31, %s1551_s14  ;;  %753 = vrot.lane.b32.xlu0 %v364_v32, %s1551_s14 }
  0xb1   : > { %v1919_v36 = vpop.permute.xlu1 %621  ;;  %v1921_v37 = vpop.permute.xlu0 %605 }
  0xb3   : > { %441 = vrot.lane.b32.xlu1 %v343_v63, %s1544_s28  ;;  %425 = vrot.lane.b32.xlu0 %v323_v1, %s1544_s28  ;;  %v386_v63 = vsel %vm346_vm1, %v383_v21, %v385_v57  ;;  %v366_v1 = vsel %vm346_vm1, %v363_v23, %v365_v58  ;;  %v1956_v57 = vld [vmem:[%s1616_s27 + $0xc0] sm:$0xff] }
  0xb4   : > { %v390_v50 = vrot.slane %v1956_v57, 1 }
  0xb5   : > { %v1925_v38 = vpop.permute.xlu1 %435  ;;  %v1927_v39 = vpop.permute.xlu0 %419 }
  0xb7   : > { %583 = vrot.lane.b32.xlu1 %v345_v15, %s1547_s5  ;;  %567 = vrot.lane.b32.xlu0 %v325_v18, %s1547_s5 }
  0xb9   : > { %v482_v59 = vpop.permute.xlu1 %481  ;;  %v466_v60 = vpop.permute.xlu0 %465 }
  0xbb   : > { %629 = vrot.lane.b32.xlu1 %v384_v31, %s1548_s6  ;;  %613 = vrot.lane.b32.xlu0 %v364_v32, %s1548_s6 }
  0xbd   : > { %v1935_v11 = vpop.permute.xlu1 %623  ;;  %v1937_v12 = vpop.permute.xlu0 %607 }
  0xbf   : > { %771 = vrot.lane.b32.xlu1 %v386_v63, %s1551_s14  ;;  %755 = vrot.lane.b32.xlu0 %v366_v1, %s1551_s14 }
  0xc1   : > { %v1941_v5 = vpop.permute.xlu1 %669  ;;  %v1943_v7 = vpop.permute.xlu0 %653 }
  0xc3   : > { %443 = vrot.lane.b32.xlu1 %v345_v15, %s1544_s28  ;;  %427 = vrot.lane.b32.xlu0 %v325_v18, %s1544_s28 }
  0xc5   : > { %v1947_v19 = vpop.permute.xlu1 %483  ;;  %v1949_v21 = vpop.permute.xlu0 %467 }
  0xc7   : > { %489 = vrot.lane.b32.xlu1 %v384_v31, %s1545_s29  ;;  %473 = vrot.lane.b32.xlu0 %v364_v32, %s1545_s29 }
  0xc9   : > { %v530_v22 = vpop.permute.xlu1 %529  ;;  %v514_v23 = vpop.permute.xlu0 %513 }
  0xcb   : > { %631 = vrot.lane.b32.xlu1 %v386_v63, %s1548_s6  ;;  %615 = vrot.lane.b32.xlu0 %v366_v1, %s1548_s6 }
  0xcd   : > { %v1958_v15 = vpop.permute.xlu1 %671  ;;  %v1960_v18 = vpop.permute.xlu0 %655 }
  0xcf   : > { %677 = vrot.lane.b32.xlu1 %v1956_v57, %s1549_s7  ;;  %661 = vrot.lane.b32.xlu0 %v1633_v10, %s1549_s7 }
  0xd1   : > { %v718_v31 = vpop.permute.xlu1 %717  ;;  %v702_v32 = vpop.permute.xlu0 %701 }
  0xd3   : > { %491 = vrot.lane.b32.xlu1 %v386_v63, %s1545_s29  ;;  %475 = vrot.lane.b32.xlu0 %v366_v1, %s1545_s29  ;;  %v825_v63 = vsel %vm814_vm3, %v808_v41, %v482_v59  ;;  %v817_v1 = vsel %vm814_vm3, %v800_v40, %v466_v60  ;;  %v798_v40 = vsel %vm797_vm2, %v1623_v2, %v1841_v44 }
  0xd4   : > { %v842_v25 = vsel %vm831_vm4, %v825_v63, %v530_v22  ;;  %v834_v42 = vsel %vm831_vm4, %v817_v1, %v514_v23  ;;  %v806_v41 = vsel %vm797_vm2, %v1633_v10, %v1849_v47  ;;  %v392_v60 = vsel %vm305_vm0, %v390_v50, %v391_v46 }
  0xd5   : > { %v1968_v58 = vpop.permute.xlu1 %531  ;;  %v1970_v56 = vpop.permute.xlu0 %515  ;;  %v823_v59 = vsel %vm814_vm3, %v806_v41, %v1853_v48  ;;  %v396_v41 = vrot.slane %v1973_v51, 2 }
  0xd6   : > { %v840_v2 = vsel %vm831_vm4, %v823_v59, %v1881_v3 }
  0xd7   : > { %537 = vrot.lane.b32.xlu1 %v1956_v57, %s1546_s30  ;;  %521 = vrot.lane.b32.xlu0 %v1633_v10, %s1546_s30  ;;  %v857_v22 = vsel %vm848_vm5, %v840_v2, %v1897_v13 }
  0xd8   : > { %v874_v50 = vsel %vm865_vm6, %v857_v22, %v1919_v36 }
  0xd9   : > { %v578_v27 = vpop.permute.xlu1 %577  ;;  %v562_v30 = vpop.permute.xlu0 %561  ;;  %v891_v3 = vsel %vm882_vm7, %v874_v50, %v1941_v5 }
  0xda   : > { %v1990_v34 = vsel %vm848_vm5, %v842_v25, %v578_v27  ;;  %v1993_v55 = vsel %vm848_vm5, %v834_v42, %v562_v30  ;;  %v815_v42 = vsel %vm814_vm3, %v798_v40, %v1855_v49  ;;  %v908_v13 = vsel %vm899_vm8, %v891_v3, %v718_v31 }
  0xdb   : > { %679 = vrot.lane.b32.xlu1 %v1973_v51, %s1549_s7  ;;  %663 = vrot.lane.b32.xlu0 %v1628_v6, %s1549_s7  ;;  %v832_v10 = vsel %vm831_vm4, %v815_v42, %v1883_v4  ;;  %v801_v25 = vsel %vm797_vm2, %v1678_v29, %v1927_v39  ;;  %v395_v27 = vrot.slane %v1956_v57, 2 }
  0xdc   : > { %v849_v48 = vsel %vm848_vm5, %v832_v10, %v1899_v14  ;;  %v818_v40 = vsel %vm814_vm3, %v801_v25, %v1949_v21 }
  0xdd   : > { %v720_v44 = vpop.permute.xlu1 %719  ;;  %v704_v47 = vpop.permute.xlu0 %703  ;;  %v866_v49 = vsel %vm865_vm6, %v849_v48, %v1921_v37  ;;  %v277_v37 = vld [vmem:[%s1616_s27 + $0xd0] sm:$0x3]  ;;  %v835_v39 = vsel %vm831_vm4, %v818_v40, %v1970_v56 }
  0xde   : > { %v883_v4 = vsel %vm882_vm7, %v866_v49, %v1943_v7  ;;  %v393_v5 = vrot.slane %v277_v37, 1 }
  0xdf   : > { %725 = vrot.lane.b32.xlu1 %v392_v60, %s1550_s12  ;;  %709 = vrot.lane.b32.xlu0 %v1646_v17, %s1550_s12  ;;  %v900_v14 = vsel %vm899_vm8, %v883_v4, %v702_v32  ;;  %v809_v32 = vsel %vm797_vm2, %v1675_v28, %v1925_v38 }
  0xe0   : > { %v826_v30 = vsel %vm814_vm3, %v809_v32, %v1947_v19  ;;  %v394_v38 = vsel %vm305_vm0, %v391_v46, %v393_v5  ;;  %v807_v46 = vsel %vm797_vm2, %v1628_v6, %v1847_v45 }
  0xe1   : > { %v766_v36 = vpop.permute.xlu1 %765  ;;  %v750_v23 = vpop.permute.xlu0 %749  ;;  %v843_v29 = vsel %vm831_vm4, %v826_v30, %v1968_v58  ;;  %v397_v58 = vsel %vm346_vm1, %v395_v27, %v396_v41 }
  0xe2   : > { %v925_v63 = vsel %vm916_vm9, %v908_v13, %v766_v36  ;;  %v917_v1 = vsel %vm916_vm9, %v900_v14, %v750_v23  ;;  %v279_v14 = vld [vmem:[%s1616_s27 + $0xe0] sm:$0xff] }
  0xe3   : > { %539 = vrot.lane.b32.xlu1 %v1973_v51, %s1546_s30  ;;  %1417 = vmatprep.mubr.msk.f32.mxu1 %vm942_vm10, %v925_v63  ;;  %v824_v51 = vsel %vm814_vm3, %v807_v46, %v1871_v61  ;;  %v404_v23 = vrot.slane %v279_v14, 1  ;;  %v2390_v63 = vld [vmem:[#allocation6_spill] sm:$0xff] }
  0xe4   : > { %523 = vrot.lane.b32.xlu0 %v1628_v6, %s1546_s30  ;;  %1405 = vmatprep.mubr.msk.f32.mxu0 %vm942_vm10, %v917_v1  ;;  %s1338_s30 = sshll.u32 %s2410_s16, 5 }
  0xe5   : > { %v438_v7 = vpop.permute.xlu1 %437  ;;  %v422_v31 = vpop.permute.xlu0 %421 }
  0xe6   : > { %v810_v22 = vsel %vm797_vm2, %v1736_v52, %v438_v7  ;;  %v278_v52 = vld [vmem:[%s1616_s27 + $0xd8] sm:$0xff] }
  0xe7   : > { %585 = vrot.lane.b32.xlu1 %v392_v60, %s1547_s5  ;;  %v403_v36 = vrot.slane %v278_v52, 1 }
  0xe8   : > { %569 = vrot.lane.b32.xlu0 %v1646_v17, %s1547_s5  ;;  %v799_v17 = vsel %vm797_vm2, %v1619_v0, %v1839_v43  ;;  %v841_v0 = vsel %vm831_vm4, %v824_v51, %v1889_v8 }
  0xe9   : > { %v580_v57 = vpop.permute.xlu1 %579  ;;  %v564_v59 = vpop.permute.xlu0 %563  ;;  %v816_v56 = vsel %vm814_vm3, %v799_v17, %v1873_v62  ;;  %v858_v61 = vsel %vm848_vm5, %v841_v0, %v1913_v33 }
  0xea   : > { %v2061_v19 = vsel %vm848_vm5, %v843_v29, %v580_v57  ;;  %v2064_v21 = vsel %vm848_vm5, %v835_v39, %v564_v59  ;;  %v833_v43 = vsel %vm831_vm4, %v816_v56, %v1891_v9  ;;  %v875_v42 = vsel %vm865_vm6, %v858_v61, %v1935_v11  ;;  %v2391_v29 = vld [vmem:[#allocation2_spill] sm:$0xff]  ;;  %v2392_v59 = vld [vmem:[#allocation3_spill] sm:$0xff] }
  0xeb   : > { %727 = vrot.lane.b32.xlu1 %v394_v38, %s1550_s12  ;;  %v850_v62 = vsel %vm848_vm5, %v833_v43, %v1915_v35  ;;  %v892_v8 = vsel %vm882_vm7, %v875_v42, %v1958_v15  ;;  %v398_v15 = vrot.slane %v277_v37, 2 }
  0xec   : > { %711 = vrot.lane.b32.xlu0 %v1643_v16, %s1550_s12  ;;  %v867_v60 = vsel %vm865_vm6, %v850_v62, %v1937_v12  ;;  %v909_v33 = vsel %vm899_vm8, %v892_v8, %v720_v44 }
  0xed   : > { %v2084_v6 = vpop.permute.xlu1 %625  ;;  %v2086_v45 = vpop.permute.xlu0 %609  ;;  %v884_v9 = vsel %vm882_vm7, %v867_v60, %v1960_v18  ;;  %v2394_v60 = vld [vmem:[#allocation5_spill] sm:$0xff] }
  0xee   : > { %v901_v35 = vsel %vm899_vm8, %v884_v9, %v704_v47  ;;  %v399_v47 = vsel %vm346_vm1, %v396_v41, %v398_v15  ;;  %v408_v41 = vrot.slane %v278_v52, 2 }
  0xef   : > { %773 = vrot.lane.b32.xlu1 %v397_v58, %s1551_s14 }
  0xf0   : > { %757 = vrot.lane.b32.xlu0 %v1655_v20, %s1551_s14 }
  0xf1   : > { %v768_v2 = vpop.permute.xlu1 %767  ;;  %v752_v11 = vpop.permute.xlu0 %751 }
  0xf2   : > { %v926_v10 = vsel %vm916_vm9, %v909_v33, %v768_v2  ;;  %v918_v12 = vsel %vm916_vm9, %v901_v35, %v752_v11 }
  0xf3   : > { %587 = vrot.lane.b32.xlu1 %v394_v38, %s1547_s5  ;;  %1418 = vmatmul.mubr.msk.f32.vlgmr.msra.gmra.mrb[0].mxu1 %vm942_vm10, %v926_v10  ;;  %v409_v38 = vrot.slane %v279_v14, 2  ;;  %v876_v10 = vsel %vm865_vm6, %v1990_v34, %v2084_v6 }
  0xf4   : > { %571 = vrot.lane.b32.xlu0 %v1643_v16, %s1547_s5  ;;  %1406 = vmatmul.mubr.msk.f32.vlgmr.msra.gmra.mrb[0].mxu0 %vm942_vm10, %v918_v12  ;;  %v802_v16 = vsel %vm797_vm2, %v1739_v53, %v422_v31  ;;  %v868_v12 = vsel %vm865_vm6, %v1993_v55, %v2086_v45 }
  0xf5   : > { %v440_v18 = vpop.permute.xlu1 %439  ;;  %v424_v44 = vpop.permute.xlu0 %423  ;;  %v410_v17 = vsel %vm346_vm1, %v408_v41, %v409_v38 }
  0xf6   : > { %v811_v37 = vsel %vm797_vm2, %v1749_v54, %v440_v18  ;;  %v803_v1 = vsel %vm797_vm2, %v2390_v63, %v424_v44 }
  0xf7   : > { %633 = vrot.lane.b32.xlu1 %v397_v58, %s1548_s6  ;;  %v2393_v58 = vld [vmem:[#allocation4_spill] sm:$0xff] }
  0xf8   : > { %617 = vrot.lane.b32.xlu0 %v1655_v20, %s1548_s6 }
  0xf9   : > { %v486_v48 = vpop.permute.xlu1 %485  ;;  %v470_v50 = vpop.permute.xlu0 %469 }
  0xfa   : > { %v827_v49 = vsel %vm814_vm3, %v810_v22, %v486_v48  ;;  %v819_v3 = vsel %vm814_vm3, %v802_v16, %v470_v50 }
  0xfb   : > { %775 = vrot.lane.b32.xlu1 %v399_v47, %s1551_s14 }
  0xfc   : > { %759 = vrot.lane.b32.xlu0 %v1662_v24, %s1551_s14 }
  0xfd   : > { %v2125_v20 = vpop.permute.xlu1 %627  ;;  %v2127_v4 = vpop.permute.xlu0 %611 }
  0xff   : > { %635 = vrot.lane.b32.xlu1 %v399_v47, %s1548_s6 }
 0x100   : > { %619 = vrot.lane.b32.xlu0 %v1662_v24, %s1548_s6  ;;  %v280_v24 = vld [vmem:[%s1616_s27 + $0xe8] sm:$0x3]  ;;  %s1333_s27 = sshll.u32 %s1526_s15, 3 }
 0x101   : > { %v674_v53 = vpop.permute.xlu1 %673  ;;  %v658_v13 = vpop.permute.xlu0 %657  ;;  %v406_v25 = vrot.slane %v280_v24, 1  ;;  %v411_v46 = vrot.slane %v280_v24, 2  ;;  %p231_p6 = scmp.lt.s32.totalorder %s1333_s27, 15 }
 0x102   : > { %v893_v15 = vsel %vm882_vm7, %v876_v10, %v674_v53  ;;  %v885_v18 = vsel %vm882_vm7, %v868_v12, %v658_v13  ;;  %v877_v13 = vsel %vm865_vm6, %v2061_v19, %v2125_v20  ;;  %v2395_v20 = vld [vmem:[#allocation7_spill] sm:$0xff] }
 0x103   : > { %681 = vrot.lane.b32.xlu1 %v278_v52, %s1549_s7  ;;  %v407_v39 = vsel %vm305_vm0, %v404_v23, %v406_v25  ;;  %v412_v0 = vsel %vm346_vm1, %v409_v38, %v411_v46  ;;  %s2412_s27 = smov (!%p231_p6, %s1333_s27), 15 }
 0x104   : > { %665 = vrot.lane.b32.xlu0 %v1669_v26, %s1549_s7  ;;  %v405_v26 = vsel %vm305_vm0, %v403_v36, %v404_v23  ;;  %s1361_s28 = sshll.u32 %s2412_s27, 4  ;;  %s1337_s29 = sshll.u32 %s2412_s27, 1 }
 0x105   : > { %v488_v5 = vpop.permute.xlu1 %487  ;;  %v472_v7 = vpop.permute.xlu0 %471 }
 0x106   : > { %v828_v31 = vsel %vm814_vm3, %v811_v37, %v488_v5  ;;  %v820_v32 = vsel %vm814_vm3, %v803_v1, %v472_v7 }
 0x107   : > { %683 = vrot.lane.b32.xlu1 %v279_v14, %s1549_s7  ;;  %v869_v14 = vsel %vm865_vm6, %v2064_v21, %v2127_v4 }
 0x108   : > { %667 = vrot.lane.b32.xlu0 %v1675_v28, %s1549_s7  ;;  %s2276_s7 = scalar_lea.vmem %s2370_s3, %s1361_s28 }
 0x109   : > { %v534_v27 = vpop.permute.xlu1 %533  ;;  %v518_v54 = vpop.permute.xlu0 %517 }
 0x10a   : > { %v844_v30 = vsel %vm831_vm4, %v827_v49, %v534_v27  ;;  %v836_v40 = vsel %vm831_vm4, %v819_v3, %v518_v54 }
 0x10b   : > { %729 = vrot.lane.b32.xlu1 %v405_v26, %s1550_s12 }
 0x10c   : > { %713 = vrot.lane.b32.xlu0 %v2391_v29, %s1550_s12 }
 0x10d   : > { %v676_v57 = vpop.permute.xlu1 %675  ;;  %v660_v28 = vpop.permute.xlu0 %659 }
 0x10e   : > { %v894_v36 = vsel %vm882_vm7, %v877_v13, %v676_v57  ;;  %v886_v23 = vsel %vm882_vm7, %v869_v14, %v660_v28 }
 0x10f   : > { %731 = vrot.lane.b32.xlu1 %v407_v39, %s1550_s12 }
 0x110   : > { %715 = vrot.lane.b32.xlu0 %v2392_v59, %s1550_s12  ;;  %s244_s12 = sadd.s32 %s1338_s30, %s1337_s29 }
 0x111   : > { %v722_v51 = vpop.permute.xlu1 %721  ;;  %v706_v56 = vpop.permute.xlu0 %705  ;;  %s1339_s15 = sshll.u32 %s244_s12, 3 }
 0x112   : > { %v910_v44 = vsel %vm899_vm8, %v893_v15, %v722_v51  ;;  %v902_v47 = vsel %vm899_vm8, %v885_v18, %v706_v56  ;;  %s2294_s8 = scalar_lea.vmem %s2371_s4, %s1339_s15 }
 0x113   : > { %777 = vrot.lane.b32.xlu1 %v410_v17, %s1551_s14 }
 0x114   : > { %761 = vrot.lane.b32.xlu0 %v2393_v58, %s1551_s14 }
 0x115   : > { %v536_v43 = vpop.permute.xlu1 %535  ;;  %v520_v61 = vpop.permute.xlu0 %519 }
 0x116   : > { %v845_v62 = vsel %vm831_vm4, %v828_v31, %v536_v43  ;;  %v837_v42 = vsel %vm831_vm4, %v820_v32, %v520_v61  ;;  %v2396_v31 = vld [vmem:[#allocation8_spill] sm:$0xff] }
 0x117   : > { %779 = vrot.lane.b32.xlu1 %v412_v0, %s1551_s14 }
 0x118   : > { %763 = vrot.lane.b32.xlu0 %v2394_v60, %s1551_s14 }
 0x119   : > { %v582_v8 = vpop.permute.xlu1 %581  ;;  %v566_v9 = vpop.permute.xlu0 %565 }
 0x11a   : > { %v2168_v33 = vsel %vm848_vm5, %v844_v30, %v582_v8  ;;  %v2171_v35 = vsel %vm848_vm5, %v836_v40, %v566_v9 }
 0x11d   : > { %v724_v2 = vpop.permute.xlu1 %723  ;;  %v708_v11 = vpop.permute.xlu0 %707 }
 0x11e   : > { %v911_v37 = vsel %vm899_vm8, %v894_v36, %v724_v2  ;;  %v903_v63 = vsel %vm899_vm8, %v886_v23, %v708_v11 }
 0x121   : > { %v770_v22 = vpop.permute.xlu1 %769  ;;  %v754_v16 = vpop.permute.xlu0 %753 }
 0x122   : > { %v927_v48 = vsel %vm916_vm9, %v910_v44, %v770_v22  ;;  %v919_v50 = vsel %vm916_vm9, %v902_v47, %v754_v16 }
 0x123   : > { %1408 = vmatprep.mubr.msk.f32.mxu0 %vm942_vm10, %v919_v50  ;;  %1420 = vmatprep.mubr.msk.f32.mxu1 %vm942_vm10, %v927_v48 }
 0x125   : > { %v442_v34 = vpop.permute.xlu1 %441  ;;  %v426_v55 = vpop.permute.xlu0 %425 }
 0x126   : > { %v812_v4 = vsel %vm797_vm2, %v2395_v20, %v442_v34  ;;  %v804_v32 = vsel %vm797_vm2, %v2396_v31, %v426_v55 }
 0x129   : > { %v584_v6 = vpop.permute.xlu1 %583  ;;  %v568_v45 = vpop.permute.xlu0 %567 }
 0x12a   : > { %v862_v49 = vsel %vm848_vm5, %v845_v62, %v584_v6  ;;  %v854_v3 = vsel %vm848_vm5, %v837_v42, %v568_v45 }
 0x12d   : > { %v630_v52 = vpop.permute.xlu1 %629  ;;  %v614_v53 = vpop.permute.xlu0 %613 }
 0x12e   : > { %v878_v42 = vsel %vm865_vm6, %v2168_v33, %v630_v52  ;;  %v870_v60 = vsel %vm865_vm6, %v2171_v35, %v614_v53 }
 0x131   : > { %v772_v1 = vpop.permute.xlu1 %771  ;;  %v756_v5 = vpop.permute.xlu0 %755 }
 0x132   : > { %v928_v7 = vsel %vm916_vm9, %v911_v37, %v772_v1  ;;  %v920_v24 = vsel %vm916_vm9, %v903_v63, %v756_v5 }
 0x133   : > { %1409 = vmatmul.mubr.msk.f32.gmra.mrb[2].mxu0 %vm942_vm10, %v920_v24  ;;  %1421 = vmatmul.mubr.msk.f32.gmra.mrb[2].mxu1 %vm942_vm10, %v928_v7 }
 0x135   : > { %v2203_v19 = vpop.permute.xlu1 %443  ;;  %v2205_v21 = vpop.permute.xlu0 %427 }
 0x139   : > { %v490_v26 = vpop.permute.xlu1 %489  ;;  %v474_v25 = vpop.permute.xlu0 %473 }
 0x13a   : > { %v829_v27 = vsel %vm814_vm3, %v812_v4, %v490_v26  ;;  %v821_v54 = vsel %vm814_vm3, %v804_v32, %v474_v25  ;;  %v2397_v4 = vld [vmem:[#allocation9_spill] sm:$0xff]  ;;  %v2398_v25 = vld [vmem:[#allocation10_spill] sm:$0xff] }
 0x13b   : > { %v813_v31 = vsel %vm797_vm2, %v2397_v4, %v2203_v19 }
 0x13d   : > { %v632_v30 = vpop.permute.xlu1 %631  ;;  %v616_v40 = vpop.permute.xlu0 %615 }
 0x13e   : > { %v879_v22 = vsel %vm865_vm6, %v862_v49, %v632_v30  ;;  %v871_v16 = vsel %vm865_vm6, %v854_v3, %v616_v40  ;;  %v805_v30 = vsel %vm797_vm2, %v2398_v25, %v2205_v21 }
 0x141   : > { %v678_v41 = vpop.permute.xlu1 %677  ;;  %v662_v38 = vpop.permute.xlu0 %661 }
 0x142   : > { %v895_v8 = vsel %vm882_vm7, %v878_v42, %v678_v41  ;;  %v887_v9 = vsel %vm882_vm7, %v870_v60, %v662_v38 }
 0x145   : > { %v492_v29 = vpop.permute.xlu1 %491  ;;  %v476_v39 = vpop.permute.xlu0 %475 }
 0x146   : > { %v822_v41 = vsel %vm814_vm3, %v805_v30, %v476_v39 }
 0x149   : > { %v538_v57 = vpop.permute.xlu1 %537  ;;  %v522_v28 = vpop.permute.xlu0 %521 }
 0x14a   : > { %v846_v1 = vsel %vm831_vm4, %v829_v27, %v538_v57  ;;  %v838_v7 = vsel %vm831_vm4, %v821_v54, %v522_v28  ;;  %v830_v27 = vsel %vm814_vm3, %v813_v31, %v492_v29 }
 0x14d   : > { %v680_v59 = vpop.permute.xlu1 %679  ;;  %v664_v17 = vpop.permute.xlu0 %663 }
 0x14e   : > { %v896_v48 = vsel %vm882_vm7, %v879_v22, %v680_v59  ;;  %v888_v50 = vsel %vm882_vm7, %v871_v16, %v664_v17  ;;  %v1159_v22 = vld [vmem:[%s2276_s7] sm:$0xff] }
 0x151   : > { %v726_v46 = vpop.permute.xlu1 %725  ;;  %v710_v51 = vpop.permute.xlu0 %709 }
 0x152   : > { %v912_v2 = vsel %vm899_vm8, %v895_v8, %v726_v46  ;;  %v904_v10 = vsel %vm899_vm8, %v887_v9, %v710_v51 }
 0x155   : > { %v540_v56 = vpop.permute.xlu1 %539 }
 0x156   : > { %v524_v58 = vpop.permute.xlu0 %523  ;;  %v847_v38 = vsel %vm831_vm4, %v830_v27, %v540_v56 }
 0x157   : > { %v839_v59 = vsel %vm831_vm4, %v822_v41, %v524_v58  ;;  %v1172_v41 = vld [vmem:[%s2276_s7 + $0x68] sm:$0xff] }
 0x159   : > { %v586_v0 = vpop.permute.xlu1 %585 }
 0x15a   : > { %v570_v43 = vpop.permute.xlu0 %569  ;;  %v863_v24 = vsel %vm848_vm5, %v846_v1, %v586_v0  ;;  %v1161_v1 = vld [vmem:[%s2276_s7 + $0x10] sm:$0xff] }
 0x15b   : > { %v855_v32 = vsel %vm848_vm5, %v838_v7, %v570_v43  ;;  %v1169_v7 = vld [vmem:[%s2276_s7 + $0x50] sm:$0xff] }
 0x15d   : > { %v728_v61 = vpop.permute.xlu1 %727 }
 0x15e   : > { %v712_v62 = vpop.permute.xlu0 %711  ;;  %v913_v34 = vsel %vm899_vm8, %v896_v48, %v728_v61 }
 0x15f   : > { %v905_v6 = vsel %vm899_vm8, %v888_v50, %v712_v62 }
 0x161   : > { %v774_v11 = vpop.permute.xlu1 %773 }
 0x162   : > { %v929_v12 = vsel %vm916_vm9, %v912_v2, %v774_v11  ;;  %v758_v15 = vpop.permute.xlu0 %757  ;;  %v2281_v2 = vld [vmem:[%s2369_s2] ss:$0 sm:$0xff] }
 0x163   : > { %v921_v18 = vsel %vm916_vm9, %v904_v10, %v758_v15  ;;  %1423 = vmatprep.mubr.msk.f32.mxu1 %vm942_vm10, %v929_v12  ;;  %v1168_v10 = vld [vmem:[%s2276_s7 + $0x48] sm:$0xff] }
 0x164   : > { %1411 = vmatprep.mubr.msk.f32.mxu0 %vm942_vm10, %v921_v18  ;;  %v1160_v15 = vld [vmem:[%s2276_s7 + $0x8] sm:$0xff] }
 0x165   : > { %v588_v33 = vpop.permute.xlu1 %587 }
 0x166   : > { %v572_v35 = vpop.permute.xlu0 %571  ;;  %v864_v17 = vsel %vm848_vm5, %v847_v38, %v588_v33 }
 0x167   : > { %v856_v51 = vsel %vm848_vm5, %v839_v59, %v572_v35  ;;  %v1167_v35 = vld [vmem:[%s2276_s7 + $0x40] sm:$0xff] }
 0x168   : > { %v1171_v59 = vld [vmem:[%s2276_s7 + $0x60] sm:$0xff] }
 0x169   : > { %v634_v44 = vpop.permute.xlu1 %633 }
 0x16a   : > { %v618_v47 = vpop.permute.xlu0 %617  ;;  %v880_v26 = vsel %vm865_vm6, %v863_v24, %v634_v44 }
 0x16b   : > { %v872_v40 = vsel %vm865_vm6, %v855_v32, %v618_v47 }
 0x16d   : > { %v776_v55 = vpop.permute.xlu1 %775 }
 0x16e   : > { %v930_v45 = vsel %vm916_vm9, %v913_v34, %v776_v55  ;;  %v760_v52 = vpop.permute.xlu0 %759 }
 0x16f   : > { %v922_v53 = vsel %vm916_vm9, %v905_v6, %v760_v52  ;;  %1424 = vmatmul.mubr.msk.f32.gmra.mrb[4].mxu1 %vm942_vm10, %v930_v45 }
 0x170   : > { %1412 = vmatmul.mubr.msk.f32.gmra.mrb[4].mxu0 %vm942_vm10, %v922_v53 }
 0x171   : > { %v636_v49 = vpop.permute.xlu1 %635 }
 0x172   : > { %v620_v3 = vpop.permute.xlu0 %619  ;;  %v881_v39 = vsel %vm865_vm6, %v864_v17, %v636_v49 }
 0x173   : > { %v873_v0 = vsel %vm865_vm6, %v856_v51, %v620_v3 }
 0x175   : > { %v682_v13 = vpop.permute.xlu1 %681 }
 0x176   : > { %v666_v14 = vpop.permute.xlu0 %665  ;;  %v897_v54 = vsel %vm882_vm7, %v880_v26, %v682_v13  ;;  %v1162_v13 = vld [vmem:[%s2276_s7 + $0x18] sm:$0xff] }
 0x177   : > { %v889_v19 = vsel %vm882_vm7, %v872_v40, %v666_v14 }
 0x179   : > { %v684_v36 = vpop.permute.xlu1 %683 }
 0x17a   : > { %v668_v23 = vpop.permute.xlu0 %667  ;;  %v898_v58 = vsel %vm882_vm7, %v881_v39, %v684_v36  ;;  %v1170_v36 = vld [vmem:[%s2276_s7 + $0x58] sm:$0xff] }
 0x17b   : > { %v890_v43 = vsel %vm882_vm7, %v873_v0, %v668_v23 }
 0x17d   : > { %v730_v37 = vpop.permute.xlu1 %729 }
 0x17e   : > { %v714_v63 = vpop.permute.xlu0 %713  ;;  %v914_v57 = vsel %vm899_vm8, %v897_v54, %v730_v37 }
 0x17f   : > { %v906_v21 = vsel %vm899_vm8, %v889_v19, %v714_v63  ;;  %v1164_v19 = vld [vmem:[%s2276_s7 + $0x28] sm:$0xff] }
 0x181   : > { %v732_v5 = vpop.permute.xlu1 %731 }
 0x182   : > { %v716_v20 = vpop.permute.xlu0 %715  ;;  %v915_v61 = vsel %vm899_vm8, %v898_v58, %v732_v5 }
 0x183   : > { %v907_v42 = vsel %vm899_vm8, %v890_v43, %v716_v20 }
 0x185   : > { %v778_v28 = vpop.permute.xlu1 %777 }
 0x186   : > { %v931_v29 = vsel %vm916_vm9, %v914_v57, %v778_v28  ;;  %v762_v46 = vpop.permute.xlu0 %761 }
 0x187   : > { %v923_v56 = vsel %vm916_vm9, %v906_v21, %v762_v46  ;;  %1426 = vmatprep.mubr.msk.f32.mxu1 %vm942_vm10, %v931_v29  ;;  %v1163_v29 = vld [vmem:[%s2276_s7 + $0x20] sm:$0xff] }
 0x188   : > { %1414 = vmatprep.mubr.msk.f32.mxu0 %vm942_vm10, %v923_v56 }
 0x189   : > { %v780_v62 = vpop.permute.xlu1 %779 }
 0x18a   : > { %v932_v60 = vsel %vm916_vm9, %v915_v61, %v780_v62  ;;  %v764_v8 = vpop.permute.xlu0 %763 }
 0x18b   : > { %v924_v9 = vsel %vm916_vm9, %v907_v42, %v764_v8  ;;  %1427 = vmatmul.mubr.msk.f32.gmra.mrb[6].mxu1 %vm942_vm10, %v932_v60  ;;  %v1174_v8 = vld [vmem:[%s2276_s7 + $0x78] sm:$0xff] }
 0x18c   : > { %1415 = vmatmul.mubr.msk.f32.gmra.mrb[6].mxu0 %vm942_vm10, %v924_v9 }
 0x1c6   : > { %v1419_v11 = vpop.f32.mrb[0].mxu1 }
 0x1c7   : > { %v1407_v12 = vpop.f32.mrb[0].mxu0  ;;  %v1152_v18 = vmul.f32 %v1419_v11, %v2281_v2  ;;  %v1097_v33 = vpop.f32.mrb[1].mxu1  ;;  %v1166_v11 = vld [vmem:[%s2276_s7 + $0x38] sm:$0xff] }
 0x1c8   : > { %v1144_v44 = vmul.f32 %v1407_v12, %v2281_v2  ;;  %v1057_v47 = vpop.f32.mrb[1].mxu0  ;;  %v1151_v16 = vmul.f32 %v2281_v2, %v1097_v33 }
 0x1c9   : > { %v1184_v48 = vadd.f32 %v1168_v10, %v1152_v18  ;;  %v1143_v50 = vmul.f32 %v2281_v2, %v1057_v47 }
 0x1ca   : > { %v1176_v34 = vadd.f32 %v1160_v15, %v1144_v44  ;;  %v1183_v55 = vadd.f32 %v1167_v35, %v1151_v16  ;;  %v1173_v15 = vld [vmem:[%s2276_s7 + $0x70] sm:$0xff] }
 0x1cb   : > { %v1200_v6 = vmax.f32 %v1184_v48, 0.0  ;;  %v1175_v45 = vadd.f32 %v1159_v22, %v1143_v50  ;;  %v1165_v35 = vld [vmem:[%s2276_s7 + $0x30] sm:$0xff] }
 0x1cc   : > { %v1192_v52 = vmax.f32 %v1176_v34, 0.0  ;;  %v1199_v53 = vmax.f32 %v1183_v55, 0.0 }
 0x1cd   : > { %1216 = vst.msk [vmem:[%s2294_s8 + $0x48] sm:$0xff] %vm797_vm2, %v1200_v6  ;;  %v1191_v49 = vmax.f32 %v1175_v45, 0.0 }
 0x1ce   : > { %1208 = vst.msk [vmem:[%s2294_s8 + $0x8] sm:$0xff] %vm797_vm2, %v1192_v52  ;;  %1215 = vst.msk [vmem:[%s2294_s8 + $0x40] sm:$0xff] %vm797_vm2, %v1199_v53 }
 0x1cf   : > { %1207 = vst.msk [vmem:[%s2294_s8] sm:$0xff] %vm797_vm2, %v1191_v49 }
 0x206   : > { %v1410_v3 = vpop.f32.mrb[2].mxu0  ;;  %v1422_v14 = vpop.f32.mrb[2].mxu1 }
 0x207   : > { %v1146_v23 = vmul.f32 %v1410_v3, %v2281_v2  ;;  %v1154_v37 = vmul.f32 %v1422_v14, %v2281_v2  ;;  %v1067_v63 = vpop.f32.mrb[3].mxu0  ;;  %v1107_v5 = vpop.f32.mrb[3].mxu1 }
 0x208   : > { %v1145_v24 = vmul.f32 %v2281_v2, %v1067_v63  ;;  %v1153_v20 = vmul.f32 %v2281_v2, %v1107_v5 }
 0x209   : > { %v1178_v4 = vadd.f32 %v1162_v13, %v1146_v23  ;;  %v1186_v31 = vadd.f32 %v1170_v36, %v1154_v37 }
 0x20a   : > { %v1177_v32 = vadd.f32 %v1161_v1, %v1145_v24  ;;  %v1185_v26 = vadd.f32 %v1169_v7, %v1153_v20 }
 0x20b   : > { %v1194_v25 = vmax.f32 %v1178_v4, 0.0  ;;  %v1202_v30 = vmax.f32 %v1186_v31, 0.0 }
 0x20c   : > { %v1193_v27 = vmax.f32 %v1177_v32, 0.0  ;;  %v1201_v40 = vmax.f32 %v1185_v26, 0.0 }
 0x20d   : > { %1210 = vst.msk [vmem:[%s2294_s8 + $0x18] sm:$0xff] %vm797_vm2, %v1194_v25  ;;  %1218 = vst.msk [vmem:[%s2294_s8 + $0x58] sm:$0xff] %vm797_vm2, %v1202_v30 }
 0x20e   : > { %1209 = vst.msk [vmem:[%s2294_s8 + $0x10] sm:$0xff] %vm797_vm2, %v1193_v27  ;;  %1217 = vst.msk [vmem:[%s2294_s8 + $0x50] sm:$0xff] %vm797_vm2, %v1201_v40 }
 0x242   : > { %v1425_v54 = vpop.f32.mrb[4].mxu1 }
 0x243   : > { %v1413_v38 = vpop.f32.mrb[4].mxu0  ;;  %v1156_v57 = vmul.f32 %v1425_v54, %v2281_v2  ;;  %v1117_v28 = vpop.f32.mrb[5].mxu1 }
 0x244   : > { %v1148_v17 = vmul.f32 %v1413_v38, %v2281_v2  ;;  %v1077_v21 = vpop.f32.mrb[5].mxu0  ;;  %v1155_v46 = vmul.f32 %v2281_v2, %v1117_v28 }
 0x245   : > { %v1188_v51 = vadd.f32 %v1172_v41, %v1156_v57  ;;  %v1147_v39 = vmul.f32 %v2281_v2, %v1077_v21 }
 0x246   : > { %v1180_v56 = vadd.f32 %v1164_v19, %v1148_v17  ;;  %v1187_v0 = vadd.f32 %v1171_v59, %v1155_v46 }
 0x247   : > { %v1204_v58 = vmax.f32 %v1188_v51, 0.0  ;;  %v1179_v43 = vadd.f32 %v1163_v29, %v1147_v39 }
 0x248   : > { %v1196_v61 = vmax.f32 %v1180_v56, 0.0  ;;  %v1203_v62 = vmax.f32 %v1187_v0, 0.0 }
 0x249   : > { %1220 = vst.msk [vmem:[%s2294_s8 + $0x68] sm:$0xff] %vm797_vm2, %v1204_v58  ;;  %v1195_v42 = vmax.f32 %v1179_v43, 0.0 }
 0x24a   : > { %1212 = vst.msk [vmem:[%s2294_s8 + $0x28] sm:$0xff] %vm797_vm2, %v1196_v61  ;;  %1219 = vst.msk [vmem:[%s2294_s8 + $0x60] sm:$0xff] %vm797_vm2, %v1203_v62 }
 0x24b   : > { %1211 = vst.msk [vmem:[%s2294_s8 + $0x20] sm:$0xff] %vm797_vm2, %v1195_v42 }
 0x25e   : > { %v1428_v60 = vpop.f32.mrb[6].mxu1 }
 0x25f   : > { %v1416_v9 = vpop.f32.mrb[6].mxu0  ;;  %v1158_v10 = vmul.f32 %v1428_v60, %v2281_v2  ;;  %v1127_v12 = vpop.f32.mrb[7].mxu1 }
 0x260   : > { %v1150_v18 = vmul.f32 %v1416_v9, %v2281_v2  ;;  %v1087_v33 = vpop.f32.mrb[7].mxu0  ;;  %v1157_v44 = vmul.f32 %v2281_v2, %v1127_v12 }
 0x261   : > { %v1190_v47 = vadd.f32 %v1174_v8, %v1158_v10  ;;  %v1149_v22 = vmul.f32 %v2281_v2, %v1087_v33 }
 0x262   : > { %v1182_v16 = vadd.f32 %v1166_v11, %v1150_v18  ;;  %v1189_v48 = vadd.f32 %v1173_v15, %v1157_v44 }
 0x263   : > { %v1206_v50 = vmax.f32 %v1190_v47, 0.0  ;;  %v1181_v34 = vadd.f32 %v1165_v35, %v1149_v22 }
 0x264   : > { %v1198_v55 = vmax.f32 %v1182_v16, 0.0  ;;  %v1205_v6 = vmax.f32 %v1189_v48, 0.0 }
 0x265   : > { %1222 = vst.msk [vmem:[%s2294_s8 + $0x78] sm:$0xff] %vm797_vm2, %v1206_v50  ;;  %v1197_v45 = vmax.f32 %v1181_v34, 0.0 }
 0x266   : > { %1214 = vst.msk [vmem:[%s2294_s8 + $0x38] sm:$0xff] %vm797_vm2, %v1198_v55  ;;  %1221 = vst.msk [vmem:[%s2294_s8 + $0x70] sm:$0xff] %vm797_vm2, %v1205_v6 }
 0x267   : > { %1213 = vst.msk [vmem:[%s2294_s8 + $0x30] sm:$0xff] %vm797_vm2, %v1197_v45 }
 0x268 PF: > { %s14_s19 = sadd.s32 1, %s1542_s19   ;;  %s2399_s15 = smov %s1534_s17 }
 0x269   : > { %p11_p7 = scmp.ge.s32.totalorder %s14_s19, 6   ;;  %s2400_s16 = smov %s1538_s18 }
 0x26a   : > { %s2401_s17 = smov %s2404_s20  ;;  %s2402_s18 = smov %s2408_s21 }
 0x26b   :  { %13 = sbr.rel (!%p11_p7) target bundleno = 3 (0x3), region = 70 }

</bundles_post_ra>
